<compile_context>
chip_gen: v7x
topology: tpu7x:2x2x1
jax: 0.10.0
libtpu: 0.0.40
codegen_flags: <defaults>
</compile_context>

<pallas_src>
import math

import jax
import jax.numpy as jnp
from jax.experimental import pallas as pl
from jax.experimental.pallas import tpu as pltpu

NUM_CLASSES = 5
FG_CLASSES = NUM_CLASSES - 1
POOL = 7
HIDDEN = 32
LOGIT_ROWS = 8                                  # NUM_CLASSES padded to a sublane multiple
PRED_ROWS = LOGIT_ROWS + 4 * FG_CLASSES         # 24: [logits+pad | dx | dy | dw | dh]
OUT_ROWS = LOGIT_ROWS + 4 * FG_CLASSES          # 24: [probs(8) | x1(4) | y1(4) | x2(4) | y2(4)]
BIAS_ROWS = 2 * HIDDEN + PRED_ROWS              # 88: packed [b6 | b7 | bpred]
BBOX_REG_WEIGHTS = (10.0, 10.0, 5.0, 5.0)
BBOX_XFORM_CLIP = math.log(1000.0 / 16.0)
SCORE_THRESH = 0.05                             # kept for completeness (filtering not applied)
NMS_THRESH = 0.5
DETECTIONS_PER_IMG = 100
ROI_TILE = 512                                  # roi lane tile (lane-dense, amortizes step cost)
NEG_INF = -1e30                                 # bias for logit pad rows -> exp() == 0


# -----------------------------------------------------------------------------
# Fused Pallas kernel: box_head + box_predictor + softmax + decode + clip
# Layout: lanes = rois, sublanes = feature / class / box-component rows.
# -----------------------------------------------------------------------------
def _fused_roi_head_kernel(x_ref, w6_ref, w7_ref, wp_ref, bias_ref,
                           props_ref, bounds_ref, out_ref):
    b6 = bias_ref[0:HIDDEN, :]                                 # [32, TM] lane-replicated
    b7 = bias_ref[HIDDEN:2 * HIDDEN, :]
    bp = bias_ref[2 * HIDDEN:, :]                              # [24, TM]

    # ---- TwoMLPHead + FastRCNNPredictor (bf16 MXU, f32 accumulation) ----
    h = jnp.dot(w6_ref[...], x_ref[...], preferred_element_type=jnp.float32) + b6
    h = jnp.maximum(h, 0.0).astype(jnp.bfloat16)
    h = jnp.dot(w7_ref[...], h, preferred_element_type=jnp.float32) + b7
    h = jnp.maximum(h, 0.0).astype(jnp.bfloat16)
    pred = jnp.dot(wp_ref[...], h, preferred_element_type=jnp.float32) + bp   # [24, TM] f32

    # ---- class scores: softmax over the aligned 8-row logit slab ----
    # (pad rows 5..7 have weight 0 and bias NEG_INF -> exp() == 0, sum unaffected)
    logits = pred[0:LOGIT_ROWS, :]
    mx = jnp.max(logits, axis=0, keepdims=True)
    e = jnp.exp(logits - mx)
    inv = pl.reciprocal(jnp.sum(e, axis=0, keepdims=True), approx=True)
    out_ref[0:LOGIT_ROWS, :] = e * inv                         # unmasked 8-sublane store

    # ---- BoxCoder.decode + clip_boxes_to_image, vectorized over 4 fg classes ----
    p = props_ref[...]                                         # [4, TM] (x1,y1,x2,y2)
    w = p[2:3, :] - p[0:1, :]
    hgt = p[3:4, :] - p[1:2, :]
    cx = p[0:1, :] + 0.5 * w
    cy = p[1:2, :] + 0.5 * hgt
    bw = bounds_ref[0:1, :]                                    # image width  per roi
    bh = bounds_ref[1:2, :]                                    # image height per roi

    # 1/bbox_reg_weights already folded into the packed predictor rows host-side.
    dx = pred[LOGIT_ROWS + 0:LOGIT_ROWS + 4, :]                # [4, TM]
    dy = pred[LOGIT_ROWS + 4:LOGIT_ROWS + 8, :]
    dw = jnp.minimum(pred[LOGIT_ROWS + 8:LOGIT_ROWS + 12, :], BBOX_XFORM_CLIP)
    dh = jnp.minimum(pred[LOGIT_ROWS + 12:LOGIT_ROWS + 16, :], BBOX_XFORM_CLIP)

    pcx = dx * w + cx
    pcy = dy * hgt + cy
    pw = jnp.exp(dw) * w
    ph = jnp.exp(dh) * hgt

    # direct component-block stores (no sublane concatenate, bounded live ranges)
    out_ref[LOGIT_ROWS + 0:LOGIT_ROWS + 4, :] = \
        jnp.minimum(jnp.maximum(pcx - 0.5 * pw, 0.0), bw)      # x1 (classes 1..4)
    out_ref[LOGIT_ROWS + 4:LOGIT_ROWS + 8, :] = \
        jnp.minimum(jnp.maximum(pcy - 0.5 * ph, 0.0), bh)      # y1
    out_ref[LOGIT_ROWS + 8:LOGIT_ROWS + 12, :] = \
        jnp.minimum(jnp.maximum(pcx + 0.5 * pw, 0.0), bw)      # x2
    out_ref[LOGIT_ROWS + 12:LOGIT_ROWS + 16, :] = \
        jnp.minimum(jnp.maximum(pcy + 0.5 * ph, 0.0), bh)      # y2


def fused_box_head_and_postprocess(pooled_t, props_t, bounds_t, params):
    d, m = pooled_t.shape
    m_pad = ((m + ROI_TILE - 1) // ROI_TILE) * ROI_TILE
    pad = m_pad - m
    if pad:                                                    # lane-dense padding
        pooled_t = jnp.pad(pooled_t, ((0, 0), (0, pad)))
        props_t = jnp.pad(props_t, ((0, 0), (0, pad)))
        bounds_t = jnp.pad(bounds_t, ((0, 0), (0, pad)))

    grid_spec = pltpu.PrefetchScalarGridSpec(
        num_scalar_prefetch=0,
        grid=(m_pad // ROI_TILE,),
        in_specs=[
            pl.BlockSpec((d, ROI_TILE), lambda i: (0, i)),            # pooled (bf16)
            pl.BlockSpec((HIDDEN, d), lambda i: (0, 0)),              # fc6 weight (resident)
            pl.BlockSpec((HIDDEN, HIDDEN), lambda i: (0, 0)),         # fc7 weight (resident)
            pl.BlockSpec((PRED_ROWS, HIDDEN), lambda i: (0, 0)),      # packed predictor weight
            pl.BlockSpec((BIAS_ROWS, ROI_TILE), lambda i: (0, 0)),    # lane-replicated biases
            pl.BlockSpec((4, ROI_TILE), lambda i: (0, i)),            # proposals (x1,y1,x2,y2)
            pl.BlockSpec((2, ROI_TILE), lambda i: (0, i)),            # per-roi image bounds
        ],
        out_specs=pl.BlockSpec((OUT_ROWS, ROI_TILE), lambda i: (0, i)),
    )
    out = pl.pallas_call(
        _fused_roi_head_kernel,
        out_shape=jax.ShapeDtypeStruct((OUT_ROWS, m_pad), jnp.float32),
        grid_spec=grid_spec,
        compiler_params=pltpu.CompilerParams(
            dimension_semantics=("parallel",)),
    )(pooled_t, params["w6t"], params["w7t"], params["wpt"], params["bias"],
      props_t, bounds_t)

    scores_t = out[1:NUM_CLASSES, :m]                          # [4, M] fg class probs
    boxes_t = out[LOGIT_ROWS:, :m]                             # [16, M] comp-major, class-minor
    return scores_t, boxes_t


# -----------------------------------------------------------------------------
# Host-side parameter packing (one-time reorder, PyTorch [out, in] layout in)
# -----------------------------------------------------------------------------
def pack_params(w6, b6, w7, b7, wc, bc, wb, bb):
    """Pack fc6/fc7/cls_score/bbox_pred into the fused-kernel layout.

    Predictor rows: [cls logits (5) | pad(3, bias=NEG_INF) | dx(c1..c4) | dy | dw | dh],
    with 1/bbox_reg_weights folded into the foreground delta rows. Biases are packed into
    one [BIAS_ROWS, ROI_TILE] lane-replicated f32 operand; weights are cast to bf16.
    """
    wx, wy, ww, wh = BBOX_REG_WEIGHTS
    inv = jnp.array([1.0 / wx, 1.0 / wy, 1.0 / ww, 1.0 / wh], jnp.float32)

    wb_cg = wb.reshape(NUM_CLASSES, 4, HIDDEN)[1:]             # [C-1, 4, HIDDEN]
    bb_cg = bb.reshape(NUM_CLASSES, 4)[1:]                     # [C-1, 4]
    wb_cg = (wb_cg * inv[None, :, None]).transpose(1, 0, 2).reshape(4 * FG_CLASSES, HIDDEN)
    bb_cg = (bb_cg * inv[None, :]).T.reshape(-1)

    pad_w = jnp.zeros((LOGIT_ROWS - NUM_CLASSES, HIDDEN), jnp.float32)
    pad_b = jnp.full((LOGIT_ROWS - NUM_CLASSES,), NEG_INF, jnp.float32)

    wpt = jnp.concatenate([wc, pad_w, wb_cg], axis=0)          # [24, HIDDEN]
    bpt = jnp.concatenate([bc, pad_b, bb_cg], axis=0)          # [24]

    bias = jnp.concatenate([b6, b7, bpt], axis=0)[:, None]     # [88, 1]
    bias = jnp.tile(bias, (1, ROI_TILE)).astype(jnp.float32)   # lane-replicated

    return {
        "w6t": w6.astype(jnp.bfloat16),
        "w7t": w7.astype(jnp.bfloat16),
        "wpt": wpt.astype(jnp.bfloat16),
        "bias": bias,
    }


# -----------------------------------------------------------------------------
# RoIAlign as batched interpolation-matrix matmuls (MXU-friendly, gather-free)
# -----------------------------------------------------------------------------
def _interp_matrix(s, size):
    """[n, P] sample coords -> [n, P, size] bilinear interpolation matrix (no gather)."""
    lo = jnp.floor(s)
    frac = s - lo
    lo_i = lo.astype(jnp.int32)
    hi_i = jnp.minimum(lo_i + 1, size - 1)
    grid = jnp.arange(size, dtype=jnp.int32)
    oh_lo = (grid[None, None, :] == lo_i[:, :, None]).astype(jnp.float32)
    oh_hi = (grid[None, None, :] == hi_i[:, :, None]).astype(jnp.float32)
    return (1.0 - frac)[:, :, None] * oh_lo + frac[:, :, None] * oh_hi


def roi_align_pooled_t(features, proposals, output_size, spatial_scale):
    """Single-level RoIAlign (bilinear, sampling_ratio=1): Ry @ feat @ Rx^T, batched.

    Returns pooled features flattened/transposed to bf16 [C*P*P, num_rois], the lane-dense
    layout consumed by the fused kernel.
    """
    # TODO(synk): torchvision zeroes samples outside [-1, H]/[-1, W] before clamping and
    # supports adaptive sampling_ratio / multi-level FPN pooling; not replicated here.
    # TODO(synk): for realistic FPN feature maps this re-reads the full C*H*W per roi;
    # replace with a gather-based Pallas RoIAlign (manual DMA of 2 rows per sample).
    _, C, H, W = features.shape
    rois = jnp.concatenate(proposals, axis=0)                  # [M, 4]
    batch_idx = jnp.concatenate(
        [jnp.full((p.shape[0],), i, jnp.int32) for i, p in enumerate(proposals)])

    idx = jnp.arange(output_size, dtype=jnp.float32) + 0.5
    scaled = rois * spatial_scale
    x1, y1 = scaled[:, 0], scaled[:, 1]
    roi_w = jnp.maximum(scaled[:, 2] - x1, 1.0)
    roi_h = jnp.maximum(scaled[:, 3] - y1, 1.0)
    sy = jnp.clip(y1[:, None] + idx[None, :] * (roi_h / output_size)[:, None], 0.0, H - 1.0)
    sx = jnp.clip(x1[:, None] + idx[None, :] * (roi_w / output_size)[:, None], 0.0, W - 1.0)

    ry = _interp_matrix(sy, H).astype(jnp.bfloat16)            # [M, P, H]
    rx = _interp_matrix(sx, W).astype(jnp.bfloat16)            # [M, P, W]
    feats = features[batch_idx].astype(jnp.bfloat16)           # [M, C, H, W]

    tmp = jnp.einsum('nph,nchw->ncpw', ry, feats,
                     preferred_element_type=jnp.float32)
    pooled = jnp.einsum('ncpw,nqw->cpqn', tmp.astype(jnp.bfloat16), rx,
                        preferred_element_type=jnp.float32)    # [C, P, P, M]
    return pooled.reshape(C * output_size * output_size, -1).astype(jnp.bfloat16)


# -----------------------------------------------------------------------------
# RoIHeads.forward (inference path)
# -----------------------------------------------------------------------------
def roi_heads_forward(features, proposals, image_shapes, params, spatial_scale):
    m = sum(p.shape[0] for p in proposals)
    pooled_t = roi_align_pooled_t(features, proposals, POOL, spatial_scale)  # [D, M] bf16
    props_t = jnp.concatenate(proposals, axis=0).T                           # [4, M]
    bounds_t = jnp.concatenate(
        [jnp.tile(jnp.array([[float(w_img)], [float(h_img)]], jnp.float32),
                  (1, p.shape[0]))
         for p, (h_img, w_img) in zip(proposals, image_shapes)], axis=1)     # [2, M]

    scores_t, boxes_t = fused_box_head_and_postprocess(
        pooled_t, props_t, bounds_t, params)

    # layout plumbing back to torch-style per-detection rows (roi-major, class-minor)
    scores = scores_t.T.reshape(-1)
    boxes = (boxes_t.reshape(4, FG_CLASSES, m)                  # (comp, class, roi)
             .transpose(2, 1, 0).reshape(-1, 4))                # (roi*class, 4)
    labels = jnp.tile(jnp.arange(1, NUM_CLASSES, dtype=jnp.int32), (m,))
    # TODO(synk): score-threshold filtering, remove_small_boxes, batched_nms and
    # per-image top-k produce data-dependent shapes; left to the caller.
    return boxes, scores, labels


if __name__ == "__main__":
    key = jax.random.PRNGKey(0)
    kf, kp1, kp2, k6, k7, kc, kb = jax.random.split(key, 7)

    B, C, Hf, Wf = 2, 4, 16, 16          # feature map: NCHW
    img_h, img_w = 64, 64
    spatial_scale = Wf / img_w           # 1/4  ('c'-type roi_align_scale = 4)
    rois_per_img = 8

    features = jax.random.normal(kf, (B, C, Hf, Wf), jnp.float32)

    # deterministic proposals (x1, y1, x2, y2) in image coordinates
    xy1 = jax.random.uniform(kp1, (B, rois_per_img, 2), minval=0.0, maxval=40.0)
    wh = jax.random.uniform(kp2, (B, rois_per_img, 2), minval=8.0, maxval=20.0)
    xy2 = jnp.minimum(xy1 + wh, jnp.array([img_w, img_h], jnp.float32))
    props_all = jnp.concatenate([xy1, xy2], axis=-1).astype(jnp.float32)
    proposals = [props_all[i] for i in range(B)]
    image_shapes = [(img_h, img_w)] * B

    in_dim = C * POOL * POOL

    def dense_init(k, fan_out, fan_in):  # PyTorch Linear layout: [out_features, in_features]
        return (jax.random.normal(k, (fan_out, fan_in), jnp.float32)
                / jnp.sqrt(jnp.float32(fan_in)))

    # raw weights in PyTorch's [out, in] layout, then packed into the fused-kernel layout
    w6 = dense_init(k6, HIDDEN, in_dim)
    b6 = jnp.zeros((HIDDEN,), jnp.float32)
    w7 = dense_init(k7, HIDDEN, HIDDEN)
    b7 = jnp.zeros((HIDDEN,), jnp.float32)
    wc = dense_init(kc, NUM_CLASSES, HIDDEN)           # cls_score
    bc = jnp.zeros((NUM_CLASSES,), jnp.float32)
    wb = dense_init(kb, NUM_CLASSES * 4, HIDDEN)       # bbox_pred (class-major, comp-minor)
    bb = jnp.zeros((NUM_CLASSES * 4,), jnp.float32)

    params = pack_params(w6, b6, w7, b7, wc, bc, wb, bb)

    fwd = jax.jit(lambda feats, props: roi_heads_forward(
        feats, props, image_shapes, params, spatial_scale))
    boxes, scores, labels = fwd(features, proposals)
    jax.block_until_ready((boxes, scores, labels))

    assert boxes.shape == (B * rois_per_img * FG_CLASSES, 4)
    assert scores.shape == (B * rois_per_img * FG_CLASSES,)
    assert labels.shape == scores.shape
    assert bool(jnp.all(jnp.isfinite(boxes))) and bool(jnp.all(jnp.isfinite(scores)))
    print("KERNEL_OK")
</pallas_src>

<mosaic_0001>
module attributes {stable_mosaic.version = 11 : i64} {
  func.func @_fused_roi_head_kernel(%arg0: i32, %arg1: memref<196x512xbf16, #tpu.memory_space<vmem>>, %arg2: memref<32x196xbf16, #tpu.memory_space<vmem>>, %arg3: memref<32x32xbf16, #tpu.memory_space<vmem>>, %arg4: memref<24x32xbf16, #tpu.memory_space<vmem>>, %arg5: memref<88x512xf32, #tpu.memory_space<vmem>>, %arg6: memref<4x512xf32, #tpu.memory_space<vmem>>, %arg7: memref<2x512xf32, #tpu.memory_space<vmem>>, %arg8: memref<24x512xf32, #tpu.memory_space<vmem>>) attributes {dimension_semantics = [#tpu.dimension_semantics<parallel>], iteration_bounds = array<i64: 1>, scalar_prefetch = 0 : i64, scratch_operands = 0 : i64, tpu.core_type = #tpu.core_type<tc>, window_params = [{transform_indices = @transform_0, window_bounds = array<i64: 196, 512>}, {pipeline_mode = #tpu.pipeline_mode<synchronous>, transform_indices = @transform_1, window_bounds = array<i64: 32, 196>}, {pipeline_mode = #tpu.pipeline_mode<synchronous>, transform_indices = @transform_2, window_bounds = array<i64: 32, 32>}, {pipeline_mode = #tpu.pipeline_mode<synchronous>, transform_indices = @transform_3, window_bounds = array<i64: 24, 32>}, {pipeline_mode = #tpu.pipeline_mode<synchronous>, transform_indices = @transform_4, window_bounds = array<i64: 88, 512>}, {transform_indices = @transform_5, window_bounds = array<i64: 4, 512>}, {transform_indices = @transform_6, window_bounds = array<i64: 2, 512>}, {transform_indices = @transform_7, window_bounds = array<i64: 24, 512>}]} {
    %c0 = arith.constant 0 : index
    %c0_0 = arith.constant 0 : index
    %0 = vector.load %arg5[%c0, %c0_0] : memref<88x512xf32, #tpu.memory_space<vmem>>, vector<32x512xf32>
    %c32 = arith.constant 32 : index
    %c0_1 = arith.constant 0 : index
    %1 = vector.load %arg5[%c32, %c0_1] : memref<88x512xf32, #tpu.memory_space<vmem>>, vector<32x512xf32>
    %c64 = arith.constant 64 : index
    %c0_2 = arith.constant 0 : index
    %2 = vector.load %arg5[%c64, %c0_2] : memref<88x512xf32, #tpu.memory_space<vmem>>, vector<24x512xf32>
    %c0_3 = arith.constant 0 : index
    %c0_4 = arith.constant 0 : index
    %3 = vector.load %arg2[%c0_3, %c0_4] : memref<32x196xbf16, #tpu.memory_space<vmem>>, vector<32x196xbf16>
    %c0_5 = arith.constant 0 : index
    %c0_6 = arith.constant 0 : index
    %4 = vector.load %arg1[%c0_5, %c0_6] : memref<196x512xbf16, #tpu.memory_space<vmem>>, vector<196x512xbf16>
    %cst = arith.constant dense<0.000000e+00> : vector<32x512xf32>
    %5 = tpu.matmul %3, %4, %cst {dimension_numbers = #tpu.dot_dimension_numbers<[1], [0], [0], [1], [0, 0, 1, 1], [], []>} : vector<32x196xbf16>, vector<196x512xbf16>, vector<32x512xf32> -> vector<32x512xf32>
    %6 = arith.addf %5, %0 : vector<32x512xf32>
    %cst_7 = arith.constant 0.000000e+00 : f32
    %7 = vector.broadcast %cst_7 : f32 to vector<32x512xf32>
    %8 = arith.maximumf %6, %7 : vector<32x512xf32>
    %9 = arith.truncf %8 : vector<32x512xf32> to vector<32x512xbf16>
    %c0_8 = arith.constant 0 : index
    %c0_9 = arith.constant 0 : index
    %10 = vector.load %arg3[%c0_8, %c0_9] : memref<32x32xbf16, #tpu.memory_space<vmem>>, vector<32x32xbf16>
    %cst_10 = arith.constant dense<0.000000e+00> : vector<32x512xf32>
    %11 = tpu.matmul %10, %9, %cst_10 {dimension_numbers = #tpu.dot_dimension_numbers<[1], [0], [0], [1], [0, 0, 1, 1], [], []>} : vector<32x32xbf16>, vector<32x512xbf16>, vector<32x512xf32> -> vector<32x512xf32>
    %12 = arith.addf %11, %1 : vector<32x512xf32>
    %cst_11 = arith.constant 0.000000e+00 : f32
    %13 = vector.broadcast %cst_11 : f32 to vector<32x512xf32>
    %14 = arith.maximumf %12, %13 : vector<32x512xf32>
    %15 = arith.truncf %14 : vector<32x512xf32> to vector<32x512xbf16>
    %c0_12 = arith.constant 0 : index
    %c0_13 = arith.constant 0 : index
    %16 = vector.load %arg4[%c0_12, %c0_13] : memref<24x32xbf16, #tpu.memory_space<vmem>>, vector<24x32xbf16>
    %cst_14 = arith.constant dense<0.000000e+00> : vector<24x512xf32>
    %17 = tpu.matmul %16, %15, %cst_14 {dimension_numbers = #tpu.dot_dimension_numbers<[1], [0], [0], [1], [0, 0, 1, 1], [], []>} : vector<24x32xbf16>, vector<32x512xbf16>, vector<24x512xf32> -> vector<24x512xf32>
    %18 = arith.addf %17, %2 : vector<24x512xf32>
    %19 = vector.extract_strided_slice %18 {offsets = [0, 0], sizes = [8, 512], strides = [1, 1]} : vector<24x512xf32> to vector<8x512xf32>
    %cst_15 = arith.constant dense<0xFF800000> : vector<512xf32>
    %20 = vector.multi_reduction <maximumf>, %19, %cst_15 [0] : vector<8x512xf32> to vector<512xf32>
    %21 = vector.shape_cast %20 : vector<512xf32> to vector<1x512xf32>
    %22 = vector.broadcast %21 : vector<1x512xf32> to vector<8x512xf32>
    %23 = arith.subf %19, %22 : vector<8x512xf32>
    %24 = math.exp %23 : vector<8x512xf32>
    %cst_16 = arith.constant dense<0.000000e+00> : vector<512xf32>
    %25 = vector.multi_reduction <add>, %24, %cst_16 [0] : vector<8x512xf32> to vector<512xf32>
    %26 = vector.shape_cast %25 : vector<512xf32> to vector<1x512xf32>
    %27 = tpu.reciprocal %26 {approx = true} : vector<1x512xf32> -> vector<1x512xf32>
    %28 = vector.broadcast %27 : vector<1x512xf32> to vector<8x512xf32>
    %29 = arith.mulf %24, %28 : vector<8x512xf32>
    %c0_17 = arith.constant 0 : index
    %c0_18 = arith.constant 0 : index
    %30 = vector.load %arg8[%c0_17, %c0_18] : memref<24x512xf32, #tpu.memory_space<vmem>>, vector<8x512xf32>
    tpu.vector_store %arg8[%c0_17, %c0_18], %29 {strides = array<i32>} : memref<24x512xf32, #tpu.memory_space<vmem>>, vector<8x512xf32>,
    %c0_19 = arith.constant 0 : index
    %c0_20 = arith.constant 0 : index
    %31 = vector.load %arg6[%c0_19, %c0_20] : memref<4x512xf32, #tpu.memory_space<vmem>>, vector<4x512xf32>
    %32 = vector.extract_strided_slice %31 {offsets = [2, 0], sizes = [1, 512], strides = [1, 1]} : vector<4x512xf32> to vector<1x512xf32>
    %33 = vector.extract_strided_slice %31 {offsets = [0, 0], sizes = [1, 512], strides = [1, 1]} : vector<4x512xf32> to vector<1x512xf32>
    %34 = arith.subf %32, %33 : vector<1x512xf32>
    %35 = vector.extract_strided_slice %31 {offsets = [3, 0], sizes = [1, 512], strides = [1, 1]} : vector<4x512xf32> to vector<1x512xf32>
    %36 = vector.extract_strided_slice %31 {offsets = [1, 0], sizes = [1, 512], strides = [1, 1]} : vector<4x512xf32> to vector<1x512xf32>
    %37 = arith.subf %35, %36 : vector<1x512xf32>
    %38 = vector.extract_strided_slice %31 {offsets = [0, 0], sizes = [1, 512], strides = [1, 1]} : vector<4x512xf32> to vector<1x512xf32>
    %cst_21 = arith.constant 5.000000e-01 : f32
    %39 = vector.broadcast %cst_21 : f32 to vector<1x512xf32>
    %40 = arith.mulf %39, %34 : vector<1x512xf32>
    %41 = arith.addf %38, %40 : vector<1x512xf32>
    %42 = vector.extract_strided_slice %31 {offsets = [1, 0], sizes = [1, 512], strides = [1, 1]} : vector<4x512xf32> to vector<1x512xf32>
    %cst_22 = arith.constant 5.000000e-01 : f32
    %43 = vector.broadcast %cst_22 : f32 to vector<1x512xf32>
    %44 = arith.mulf %43, %37 : vector<1x512xf32>
    %45 = arith.addf %42, %44 : vector<1x512xf32>
    %c0_23 = arith.constant 0 : index
    %c0_24 = arith.constant 0 : index
    %46 = vector.load %arg7[%c0_23, %c0_24] : memref<2x512xf32, #tpu.memory_space<vmem>>, vector<1x512xf32>
    %c1 = arith.constant 1 : index
    %c0_25 = arith.constant 0 : index
    %47 = vector.load %arg7[%c1, %c0_25] : memref<2x512xf32, #tpu.memory_space<vmem>>, vector<1x512xf32>
    %48 = vector.extract_strided_slice %18 {offsets = [8, 0], sizes = [4, 512], strides = [1, 1]} : vector<24x512xf32> to vector<4x512xf32>
    %49 = vector.extract_strided_slice %18 {offsets = [12, 0], sizes = [4, 512], strides = [1, 1]} : vector<24x512xf32> to vector<4x512xf32>
    %50 = vector.extract_strided_slice %18 {offsets = [16, 0], sizes = [4, 512], strides = [1, 1]} : vector<24x512xf32> to vector<4x512xf32>
    %cst_26 = arith.constant 4.13516665 : f32
    %51 = vector.broadcast %cst_26 : f32 to vector<4x512xf32>
    %52 = arith.minimumf %50, %51 : vector<4x512xf32>
    %53 = vector.extract_strided_slice %18 {offsets = [20, 0], sizes = [4, 512], strides = [1, 1]} : vector<24x512xf32> to vector<4x512xf32>
    %cst_27 = arith.constant 4.13516665 : f32
    %54 = vector.broadcast %cst_27 : f32 to vector<4x512xf32>
    %55 = arith.minimumf %53, %54 : vector<4x512xf32>
    %56 = vector.broadcast %34 : vector<1x512xf32> to vector<4x512xf32>
    %57 = arith.mulf %48, %56 : vector<4x512xf32>
    %58 = vector.broadcast %41 : vector<1x512xf32> to vector<4x512xf32>
    %59 = arith.addf %57, %58 : vector<4x512xf32>
    %60 = vector.broadcast %37 : vector<1x512xf32> to vector<4x512xf32>
    %61 = arith.mulf %49, %60 : vector<4x512xf32>
    %62 = vector.broadcast %45 : vector<1x512xf32> to vector<4x512xf32>
    %63 = arith.addf %61, %62 : vector<4x512xf32>
    %64 = math.exp %52 : vector<4x512xf32>
    %65 = vector.broadcast %34 : vector<1x512xf32> to vector<4x512xf32>
    %66 = arith.mulf %64, %65 : vector<4x512xf32>
    %67 = math.exp %55 : vector<4x512xf32>
    %68 = vector.broadcast %37 : vector<1x512xf32> to vector<4x512xf32>
    %69 = arith.mulf %67, %68 : vector<4x512xf32>
    %cst_28 = arith.constant 5.000000e-01 : f32
    %70 = vector.broadcast %cst_28 : f32 to vector<4x512xf32>
    %71 = arith.mulf %70, %66 : vector<4x512xf32>
    %72 = arith.subf %59, %71 : vector<4x512xf32>
    %cst_29 = arith.constant 0.000000e+00 : f32
    %73 = vector.broadcast %cst_29 : f32 to vector<4x512xf32>
    %74 = arith.maximumf %72, %73 : vector<4x512xf32>
    %75 = vector.broadcast %46 : vector<1x512xf32> to vector<4x512xf32>
    %76 = arith.minimumf %74, %75 : vector<4x512xf32>
    %c8 = arith.constant 8 : index
    %c0_30 = arith.constant 0 : index
    %77 = vector.load %arg8[%c8, %c0_30] : memref<24x512xf32, #tpu.memory_space<vmem>>, vector<4x512xf32>
    tpu.vector_store %arg8[%c8, %c0_30], %76 {strides = array<i32>} : memref<24x512xf32, #tpu.memory_space<vmem>>, vector<4x512xf32>,
    %cst_31 = arith.constant 5.000000e-01 : f32
    %78 = vector.broadcast %cst_31 : f32 to vector<4x512xf32>
    %79 = arith.mulf %78, %69 : vector<4x512xf32>
    %80 = arith.subf %63, %79 : vector<4x512xf32>
    %cst_32 = arith.constant 0.000000e+00 : f32
    %81 = vector.broadcast %cst_32 : f32 to vector<4x512xf32>
    %82 = arith.maximumf %80, %81 : vector<4x512xf32>
    %83 = vector.broadcast %47 : vector<1x512xf32> to vector<4x512xf32>
    %84 = arith.minimumf %82, %83 : vector<4x512xf32>
    %c12 = arith.constant 12 : index
    %c0_33 = arith.constant 0 : index
    %85 = vector.load %arg8[%c12, %c0_33] : memref<24x512xf32, #tpu.memory_space<vmem>>, vector<4x512xf32>
    tpu.vector_store %arg8[%c12, %c0_33], %84 {strides = array<i32>} : memref<24x512xf32, #tpu.memory_space<vmem>>, vector<4x512xf32>,
    %cst_34 = arith.constant 5.000000e-01 : f32
    %86 = vector.broadcast %cst_34 : f32 to vector<4x512xf32>
    %87 = arith.mulf %86, %66 : vector<4x512xf32>
    %88 = arith.addf %59, %87 : vector<4x512xf32>
    %cst_35 = arith.constant 0.000000e+00 : f32
    %89 = vector.broadcast %cst_35 : f32 to vector<4x512xf32>
    %90 = arith.maximumf %88, %89 : vector<4x512xf32>
    %91 = vector.broadcast %46 : vector<1x512xf32> to vector<4x512xf32>
    %92 = arith.minimumf %90, %91 : vector<4x512xf32>
    %c16 = arith.constant 16 : index
    %c0_36 = arith.constant 0 : index
    %93 = vector.load %arg8[%c16, %c0_36] : memref<24x512xf32, #tpu.memory_space<vmem>>, vector<4x512xf32>
    tpu.vector_store %arg8[%c16, %c0_36], %92 {strides = array<i32>} : memref<24x512xf32, #tpu.memory_space<vmem>>, vector<4x512xf32>,
    %cst_37 = arith.constant 5.000000e-01 : f32
    %94 = vector.broadcast %cst_37 : f32 to vector<4x512xf32>
    %95 = arith.mulf %94, %69 : vector<4x512xf32>
    %96 = arith.addf %63, %95 : vector<4x512xf32>
    %cst_38 = arith.constant 0.000000e+00 : f32
    %97 = vector.broadcast %cst_38 : f32 to vector<4x512xf32>
    %98 = arith.maximumf %96, %97 : vector<4x512xf32>
    %99 = vector.broadcast %47 : vector<1x512xf32> to vector<4x512xf32>
    %100 = arith.minimumf %98, %99 : vector<4x512xf32>
    %c20 = arith.constant 20 : index
    %c0_39 = arith.constant 0 : index
    %101 = vector.load %arg8[%c20, %c0_39] : memref<24x512xf32, #tpu.memory_space<vmem>>, vector<4x512xf32>
    tpu.vector_store %arg8[%c20, %c0_39], %100 {strides = array<i32>} : memref<24x512xf32, #tpu.memory_space<vmem>>, vector<4x512xf32>,
    return
  }
  func.func @transform_0(%arg0: i32) -> (i32, i32) {
    %c0_i32 = arith.constant 0 : i32
    %c0_i32_0 = arith.constant 0 : i32
    return %c0_i32, %arg0 : i32, i32
  }
  func.func @transform_1(%arg0: i32) -> (i32, i32) {
    %c0_i32 = arith.constant 0 : i32
    %c0_i32_0 = arith.constant 0 : i32
    %c0_i32_1 = arith.constant 0 : i32
    return %c0_i32, %c0_i32_0 : i32, i32
  }
  func.func @transform_2(%arg0: i32) -> (i32, i32) {
    %c0_i32 = arith.constant 0 : i32
    %c0_i32_0 = arith.constant 0 : i32
    %c0_i32_1 = arith.constant 0 : i32
    return %c0_i32, %c0_i32_0 : i32, i32
  }
  func.func @transform_3(%arg0: i32) -> (i32, i32) {
    %c0_i32 = arith.constant 0 : i32
    %c0_i32_0 = arith.constant 0 : i32
    %c0_i32_1 = arith.constant 0 : i32
    return %c0_i32, %c0_i32_0 : i32, i32
  }
  func.func @transform_4(%arg0: i32) -> (i32, i32) {
    %c0_i32 = arith.constant 0 : i32
    %c0_i32_0 = arith.constant 0 : i32
    %c0_i32_1 = arith.constant 0 : i32
    return %c0_i32, %c0_i32_0 : i32, i32
  }
  func.func @transform_5(%arg0: i32) -> (i32, i32) {
    %c0_i32 = arith.constant 0 : i32
    %c0_i32_0 = arith.constant 0 : i32
    return %c0_i32, %arg0 : i32, i32
  }
  func.func @transform_6(%arg0: i32) -> (i32, i32) {
    %c0_i32 = arith.constant 0 : i32
    %c0_i32_0 = arith.constant 0 : i32
    return %c0_i32, %arg0 : i32, i32
  }
  func.func @transform_7(%arg0: i32) -> (i32, i32) {
    %c0_i32 = arith.constant 0 : i32
    %c0_i32_0 = arith.constant 0 : i32
    return %c0_i32, %arg0 : i32, i32
  }
}

</mosaic_0001>

<bundles_post_ra>
// kernel: tile.8
= control target key start
LH: loop header
LB: loop body
LE: loop exit
PB: predicated region body
PF: predicated region fallthrough
CT: control target
= control target key end

     0   :  { %s28_s0 = inlined_call_operand.vmem [shape: s32[4], index: 0, kind: input, shape index: {}]   ;;  %s29_s1 = inlined_call_operand.vmem [shape: s32[16,4], index: 1, kind: output, shape index: {}]  }
   0x1   :  { %v4_v0 = vld [vmem:[%s28_s0] ss:$0 sm:$0xff] }
   0x2   :  { %5 = vst [vmem:[%s29_s1] sm:$0xff] %v4_v0  ;;  %8 = vst [vmem:[%s29_s1 + $0x8] sm:$0xff] %v4_v0 }

// kernel: tile.9
= control target key start
LH: loop header
LB: loop body
LE: loop exit
PB: predicated region body
PF: predicated region fallthrough
CT: control target
= control target key end

     0   :  { %s167_s10 = smov 60   ;;  %s168_s11 = smov 52   ;;  %vm4_vm0 = vcmask 31744   ;;  %s253_s0 = inlined_call_operand.vmem [shape: s32[16,4], index: 0, kind: input, shape index: {}]   ;;  %s254_s1 = inlined_call_operand.hbm [shape: s32[64], index: 1, kind: output, shape index: {}]  }
   0x1   :  { %v112_v0 = vld [vmem:[%s253_s0 + $0xf] sm:$0x1]   ;;  %v114_v1 = vld [vmem:[%s253_s0 + $0xd] sm:$0x1]   ;;  %v113_v2 = vld [vmem:[%s253_s0 + $0xe] sm:$0x1]  }
   0x2   :  { %8 = vrot.lane.b32.xlu0 %v112_v0, %s167_s10  ;;  %20 = vrot.lane.b32.xlu1 %v114_v1, %s168_s11  ;;  %v115_v3 = vld [vmem:[%s253_s0 + $0xc] sm:$0x1]   ;;  %s169_s16 = smov 56   ;;  %s170_s17 = smov 48   ;;  %v116_v4 = vld [vmem:[%s253_s0 + $0xb] sm:$0x1]  }
   0x3   :  { %v117_v5 = vld [vmem:[%s253_s0 + $0xa] sm:$0x1]   ;;  %v3_v6 = vld [vmem:[%s253_s0] sm:$0x1]  }
   0x6   :  { %14 = vrot.lane.b32.xlu0 %v113_v2, %s169_s16  ;;  %26 = vrot.lane.b32.xlu1 %v115_v3, %s170_s17 }
   0x7   :  { %2 = vsyncpa [#allocation1], 0  ;;  %s171_s24 = smov 44   ;;  %s172_s25 = smov 40   ;;  %5 = vst.msk [vmem:[#allocation2] sm:$0x1] %vm4_vm0, %v3_v6  }
   0x8   :  { %v118_v7 = vld [vmem:[%s253_s0 + $0x9] sm:$0x1]   ;;  %v119_v8 = vld [vmem:[%s253_s0 + $0x8] sm:$0x1]   ;;  %s173_s30 = smov 36   ;;  %s174_s2 = smov 32  }
   0x9   :  { %v120_v9 = vld [vmem:[%s253_s0 + $0x7] sm:$0x1]   ;;  %v121_v10 = vld [vmem:[%s253_s0 + $0x6] sm:$0x1]   ;;  %s175_s7 = smov 28   ;;  %s176_s8 = smov 24  }
   0xa   :  { %32 = vrot.lane.b32.xlu0 %v116_v4, %s171_s24  ;;  %38 = vrot.lane.b32.xlu1 %v117_v5, %s172_s25  ;;  %v122_v11 = vld [vmem:[%s253_s0 + $0x5] sm:$0x1]   ;;  %v123_v12 = vld [vmem:[%s253_s0 + $0x4] sm:$0x1]   ;;  %s177_s13 = smov 20   ;;  %s178_s14 = smov 16  }
   0xb   :  { %v124_v13 = vld [vmem:[%s253_s0 + $0x3] sm:$0x1]   ;;  %v125_v14 = vld [vmem:[%s253_s0 + $0x2] sm:$0x1]   ;;  %s179_s19 = smov 12   ;;  %s180_s20 = smov 8  }
   0xc   :  { %v126_v15 = vld [vmem:[%s253_s0 + $0x1] sm:$0x1]   ;;  %s181_s0 = smov 4   ;;  %vm10_vm1 = vcmask 523744   ;;  %vm16_vm2 = vcmask 490944   ;;  %vm22_vm3 = vcmask 458144  }
   0xd   :  { %vm28_vm4 = vcmask 425344   ;;  %vm34_vm5 = vcmask 392544   ;;  %vm40_vm6 = vcmask 359744   ;;  %vm46_vm7 = vcmask 326944   ;;  %s182_s23 = smov [#allocation0]  }
   0xe   :  { %44 = vrot.lane.b32.xlu0 %v118_v7, %s173_s30  ;;  %50 = vrot.lane.b32.xlu1 %v119_v8, %s174_s2  ;;  %vm52_vm8 = vcmask 294144   ;;  %vm58_vm9 = vcmask 261344   ;;  %vm64_vm10 = vcmask 228544   ;;  %vm70_vm11 = vcmask 195744   ;;  %s106_s24 = sshll.u32 %s182_s23, 4  ;;  %s107_s24 = int_to_ptr.vmem [resolvable:$true] %s106_s24 }
   0xf   :  { %vm76_vm12 = vcmask 162944   ;;  %vm82_vm13 = vcmask 130144   ;;  %vm88_vm14 = vcmask 97344   ;;  %vm94_vm15 = vcmask 64544   ;;  %s143_s25 = scalar_lea.vmem %s107_s24, 16  ;;  %s147_s26 = scalar_lea.vmem %s107_s24, 32 }
  0x10   :  { %p144_p0 = scmp.ne.s32.totalorder %s107_s24, %s143_s25  ;;  %p148_p1 = scmp.lt.s32.totalorder %s107_s24, %s107_s24 }
  0x11   :  { %p149_p2 = scmp.lt.s32.totalorder %s147_s26, %s143_s25 }
  0x12   :  { %56 = vrot.lane.b32.xlu0 %v120_v9, %s175_s7  ;;  %62 = vrot.lane.b32.xlu1 %v121_v10, %s176_s8 }
  0x13   :  { %p150_p3 = por %p149_p2, %p148_p1 }
  0x15   :  { %p151_p4 = pnand %p150_p3, %p144_p0 }
  0x16   :  { %68 = vrot.lane.b32.xlu0 %v122_v11, %s177_s13  ;;  %74 = vrot.lane.b32.xlu1 %v123_v12, %s178_s14 }
  0x1a   :  { %80 = vrot.lane.b32.xlu0 %v124_v13, %s179_s19  ;;  %86 = vrot.lane.b32.xlu1 %v125_v14, %s180_s20 }
  0x1e   :  { %92 = vrot.lane.b32.xlu0 %v126_v15, %s181_s0 }
  0x74   :  { %v9_v16 = vpop.permute.xlu0 %8   ;;  %v21_v17 = vpop.permute.xlu1 %20  }
  0x75   :  { %11 = vst.msk [vmem:[#allocation2] sm:$0x1] %vm10_vm1, %v9_v16  }
  0x78   :  { %v15_v18 = vpop.permute.xlu0 %14   ;;  %v27_v19 = vpop.permute.xlu1 %26  }
  0x79   :  { %17 = vst.msk [vmem:[#allocation2] sm:$0x1] %vm16_vm2, %v15_v18  }
  0x7a   :  { %23 = vst.msk [vmem:[#allocation2] sm:$0x1] %vm22_vm3, %v21_v17  }
  0x7b   :  { %29 = vst.msk [vmem:[#allocation2] sm:$0x1] %vm28_vm4, %v27_v19  }
  0x7c   :  { %v33_v20 = vpop.permute.xlu0 %32   ;;  %v39_v21 = vpop.permute.xlu1 %38  }
  0x7d   :  { %35 = vst.msk [vmem:[#allocation2] sm:$0x1] %vm34_vm5, %v33_v20  }
  0x7e   :  { %41 = vst.msk [vmem:[#allocation2] sm:$0x1] %vm40_vm6, %v39_v21  }
  0x80   :  { %v45_v22 = vpop.permute.xlu0 %44   ;;  %v51_v23 = vpop.permute.xlu1 %50  }
  0x81   :  { %47 = vst.msk [vmem:[#allocation2] sm:$0x1] %vm46_vm7, %v45_v22  }
  0x82   :  { %53 = vst.msk [vmem:[#allocation2] sm:$0x1] %vm52_vm8, %v51_v23  }
  0x84   :  { %v57_v24 = vpop.permute.xlu0 %56   ;;  %v63_v25 = vpop.permute.xlu1 %62  }
  0x85   :  { %59 = vst.msk [vmem:[#allocation2] sm:$0x1] %vm58_vm9, %v57_v24  }
  0x86   :  { %65 = vst.msk [vmem:[#allocation2] sm:$0x1] %vm64_vm10, %v63_v25  }
  0x88   :  { %v69_v26 = vpop.permute.xlu0 %68   ;;  %v75_v27 = vpop.permute.xlu1 %74  }
  0x89   :  { %71 = vst.msk [vmem:[#allocation2] sm:$0x1] %vm70_vm11, %v69_v26  }
  0x8a   :  { %77 = vst.msk [vmem:[#allocation2] sm:$0x1] %vm76_vm12, %v75_v27  }
  0x8c   :  { %v81_v28 = vpop.permute.xlu0 %80   ;;  %v87_v29 = vpop.permute.xlu1 %86  }
  0x8d   :  { %83 = vst.msk [vmem:[#allocation2] sm:$0x1] %vm82_vm13, %v81_v28  }
  0x8e   :  { %89 = vst.msk [vmem:[#allocation2] sm:$0x1] %vm88_vm14, %v87_v29  }
  0x90   :  { %v93_v30 = vpop.permute.xlu0 %92  }
  0x91   :  { %95 = vst.msk [vmem:[#allocation2] sm:$0x1] %vm94_vm15, %v93_v30  }
  0x98   :  { %v99_v31 = vld [vmem:[#allocation2] sm:$0x1] }
  0x99   :  { %101 = vst [vmem:[#allocation0] sm:$0x1] %v99_v31 }
  0x9a   :  { %154 = shalt.err (!%p151_p4)
}
  0x9b   :  { %s155_s29 = scalar_lea.hbm %s254_s1, 16 }
  0x9c   :  { %p156_p5 = scmp.ne.s32.totalorder %s254_s1, %s155_s29  ;;  %p159_p6 = scmp.lt.u32.totalorder %s155_s29, %s254_s1 }
  0x9e   :  { %p161_p7 = pnand %p159_p6, %p156_p5 }
  0xa0   :  { %164 = shalt.err (!%p161_p7)
}
  0xa1   :  { %109 = dma.vmem_to_hbm [thread:$0]  %s107_s24, 16, %s254_s1, [#allocation1]  }
  0xa2   :  { %165 = dma.done.wait [#allocation1], 16  }
  0xa3   :  { %166 = vsyncadd [#allocation1], 4294967280 }
  0xa4   :  { %111 = vsyncpa [#allocation1], 1 }

// kernel: _lambda_.1
= control target key start
LH: loop header
LB: loop body
LE: loop exit
PB: predicated region body
PF: predicated region fallthrough
CT: control target
= control target key end

     0   :  { %vm393_vm0 = vcmask 556032   ;;  %vm400_vm1 = vcmask 1041408   ;;  %v1400_v60 = vmov 0   ;;  %vm557_vm2 = vcmask 261120   ;;  %s2079_s0 = inlined_call_operand.vmem [shape: bf16[196,512], index: 0, kind: input, shape index: {}]   ;;  %s2080_s1 = inlined_call_operand.vmem [shape: bf16[32,196], index: 1, kind: input, shape index: {}]   ;;  %s2081_s2 = inlined_call_operand.vmem [shape: bf16[32,32], index: 2, kind: input, shape index: {}]   ;;  %s2082_s4 = inlined_call_operand.vmem [shape: f32[88,512], index: 4, kind: input, shape index: {}]   ;;  %s2083_s3 = inlined_call_operand.vmem [shape: bf16[24,32], index: 3, kind: input, shape index: {}]   ;;  %s2084_s5 = inlined_call_operand.vmem [shape: f32[4,512], index: 5, kind: input, shape index: {}]   ;;  %s2085_s6 = inlined_call_operand.vmem [shape: f32[2,512], index: 6, kind: input, shape index: {}]   ;;  %s2086_s7 = inlined_call_operand.vmem [shape: f32[24,512], index: 7, kind: output, shape index: {}]  }
   0x1   :  { %v1290_v0 = vld [vmem:[%s2079_s0 + $0x4] ss:$16 sps:$4 sm:$0xff]   ;;  %v1292_v1 = vld [vmem:[%s2079_s0 + $0xc] ss:$16 sps:$4 sm:$0xff]   ;;  %v1294_v2 = vld [vmem:[%s2079_s0] ss:$16 sps:$4 sm:$0xff]  }
   0x2   :  { %413 = vmatprep.subr.bf16.mxu0 %v1290_v0  ;;  %v1295_v3 = vld [vmem:[%s2079_s0 + $0x8] ss:$16 sps:$4 sm:$0xff]   ;;  %466 = vmatprep.subr.bf16.mxu1 %v1292_v1  ;;  %v1296_v4 = vld [vmem:[%s2079_s0 + $0x24] ss:$16 sps:$4 sm:$0xff]   ;;  %v1298_v5 = vld [vmem:[%s2079_s0 + $0x2c] ss:$16 sps:$4 sm:$0xff]  }
   0x3   :  { %414 = vmatpush1.bf16.msra.mxu0 %v1294_v2  ;;  %467 = vmatpush1.bf16.msra.mxu1 %v1295_v3  ;;  %v1300_v6 = vld [vmem:[%s2079_s0 + $0x20] ss:$16 sps:$4 sm:$0xff]   ;;  %v1301_v7 = vld [vmem:[%s2079_s0 + $0x28] ss:$16 sps:$4 sm:$0xff]   ;;  %v1302_v8 = vld [vmem:[%s2079_s0 + $0x44] ss:$16 sps:$4 sm:$0xff]  }
   0x4   :  { %415 = vmatprep.subr.bf16.mxu0 %v1296_v4  ;;  %468 = vmatprep.subr.bf16.mxu1 %v1298_v5  ;;  %v1304_v9 = vld [vmem:[%s2079_s0 + $0x4c] ss:$16 sps:$4 sm:$0xff]   ;;  %v1306_v10 = vld [vmem:[%s2079_s0 + $0x40] ss:$16 sps:$4 sm:$0xff]   ;;  %v1307_v11 = vld [vmem:[%s2079_s0 + $0x48] ss:$16 sps:$4 sm:$0xff]  }
   0x5   :  { %v1308_v12 = vld [vmem:[%s2079_s0 + $0x64] ss:$16 sps:$4 sm:$0xff]   ;;  %v1310_v13 = vld [vmem:[%s2079_s0 + $0x6c] ss:$16 sps:$4 sm:$0xff]   ;;  %v1312_v14 = vld [vmem:[%s2079_s0 + $0x60] ss:$16 sps:$4 sm:$0xff]  }
   0x6   :  { %v1313_v15 = vld [vmem:[%s2079_s0 + $0x68] ss:$16 sps:$4 sm:$0xff]   ;;  %v1314_v16 = vld [vmem:[%s2079_s0 + $0x84] ss:$16 sps:$4 sm:$0xff]   ;;  %v1316_v17 = vld [vmem:[%s2079_s0 + $0x8c] ss:$16 sps:$4 sm:$0xff]  }
   0x7   :  { %416 = vmatpush1.bf16.msra.mxu0 %v1300_v6  ;;  %469 = vmatpush1.bf16.msra.mxu1 %v1301_v7  ;;  %v1318_v18 = vld [vmem:[%s2079_s0 + $0x80] ss:$16 sps:$4 sm:$0xff]   ;;  %v1319_v19 = vld [vmem:[%s2079_s0 + $0x88] ss:$16 sps:$4 sm:$0xff]   ;;  %v1320_v20 = vld [vmem:[%s2079_s0 + $0xa4] ss:$16 sps:$4 sm:$0xff]  }
   0x8   :  { %417 = vmatprep.subr.bf16.mxu0 %v1302_v8  ;;  %470 = vmatprep.subr.bf16.mxu1 %v1304_v9  ;;  %v1322_v21 = vld [vmem:[%s2079_s0 + $0xac] ss:$16 sps:$4 sm:$0xff]   ;;  %v1324_v22 = vld [vmem:[%s2079_s0 + $0xa0] ss:$16 sps:$4 sm:$0xff]   ;;  %v1325_v23 = vld [vmem:[%s2079_s0 + $0xa8] ss:$16 sps:$4 sm:$0xff]  }
   0x9   :  { %v1326_v24 = vld [vmem:[%s2079_s0 + $0xc4] ss:$16 sps:$4 sm:$0xff]   ;;  %v1328_v25 = vld [vmem:[%s2079_s0 + $0xcc] ss:$16 sps:$4 sm:$0xff]   ;;  %v1330_v26 = vld [vmem:[%s2079_s0 + $0xc0] ss:$16 sps:$4 sm:$0xff]  }
   0xa   :  { %v1331_v27 = vld [vmem:[%s2079_s0 + $0xc8] ss:$16 sps:$4 sm:$0xff]   ;;  %v1332_v28 = vld [vmem:[%s2079_s0 + $0xe4] ss:$16 sps:$4 sm:$0xff]   ;;  %v1334_v29 = vld [vmem:[%s2079_s0 + $0xec] ss:$16 sps:$4 sm:$0xff]  }
   0xb   :  { %418 = vmatpush1.bf16.msra.mxu0 %v1306_v10  ;;  %471 = vmatpush1.bf16.msra.mxu1 %v1307_v11  ;;  %v1336_v30 = vld [vmem:[%s2079_s0 + $0xe0] ss:$16 sps:$4 sm:$0xff]   ;;  %v1337_v31 = vld [vmem:[%s2079_s0 + $0xe8] ss:$16 sps:$4 sm:$0xff]   ;;  %v1338_v32 = vld [vmem:[%s2079_s0 + $0x104] ss:$16 sps:$4 sm:$0xff]  }
   0xc   :  { %419 = vmatprep.subr.bf16.mxu0 %v1308_v12  ;;  %472 = vmatprep.subr.bf16.mxu1 %v1310_v13  ;;  %v1340_v33 = vld [vmem:[%s2079_s0 + $0x10c] ss:$16 sps:$4 sm:$0xff]   ;;  %v1342_v34 = vld [vmem:[%s2079_s0 + $0x100] ss:$16 sps:$4 sm:$0xff]   ;;  %v1343_v35 = vld [vmem:[%s2079_s0 + $0x108] ss:$16 sps:$4 sm:$0xff]  }
   0xd   :  { %v1344_v36 = vld [vmem:[%s2079_s0 + $0x124] ss:$16 sps:$4 sm:$0xff]   ;;  %v1346_v37 = vld [vmem:[%s2079_s0 + $0x12c] ss:$16 sps:$4 sm:$0xff]   ;;  %v1348_v39 = vld [vmem:[%s2079_s0 + $0x120] ss:$16 sps:$4 sm:$0xff]  }
   0xe   :  { %v1368_v38 = vld [vmem:[%s2080_s1 + $0x4] ss:$8 sps:$4 sm:$0xff]   ;;  %v1349_v40 = vld [vmem:[%s2079_s0 + $0x128] ss:$16 sps:$4 sm:$0xff]   ;;  %v1354_v43 = vld [vmem:[%s2079_s0 + $0x140] ss:$16 sps:$4 sm:$0xff]  }
   0xf   :  { %420 = vmatpush1.bf16.msra.mxu0 %v1312_v14  ;;  %473 = vmatpush1.bf16.msra.mxu1 %v1313_v15  ;;  %v1350_v41 = vld [vmem:[%s2079_s0 + $0x144] ss:$16 sps:$4 sm:$0xff]   ;;  %v1352_v42 = vld [vmem:[%s2079_s0 + $0x14c] ss:$16 sps:$4 sm:$0xff]   ;;  %v1355_v44 = vld [vmem:[%s2079_s0 + $0x148] ss:$16 sps:$4 sm:$0xff]  }
  0x10   :  { %421 = vmatprep.subr.bf16.mxu0 %v1314_v16  ;;  %474 = vmatprep.subr.bf16.mxu1 %v1316_v17  ;;  %v1356_v45 = vld [vmem:[%s2079_s0 + $0x164] ss:$16 sps:$4 sm:$0xff]   ;;  %v1358_v46 = vld [vmem:[%s2079_s0 + $0x16c] ss:$16 sps:$4 sm:$0xff]   ;;  %v1360_v49 = vld [vmem:[%s2079_s0 + $0x160] ss:$16 sps:$4 sm:$0xff]  }
  0x11   :  { %1269 = vmatprep.mubr.msk.bf16.mxu0 %vm393_vm0, %v1368_v38  ;;  %1272 = vmatprep.mubr.msk.bf16.mxu1 %vm393_vm0, %v1368_v38  ;;  %v123_v47 = vld [vmem:[%s2079_s0 + $0x180] sm:$0x33]  ;;  %v124_v48 = vld [vmem:[%s2079_s0 + $0x188] sm:$0x33]  ;;  %v1369_v58 = vld [vmem:[%s2080_s1 + $0x14] ss:$8 sps:$4 sm:$0xff]  }
  0x12   :  { %v1361_v50 = vld [vmem:[%s2079_s0 + $0x168] ss:$16 sps:$4 sm:$0xff]   ;;  %v1265_v51 = vcombine.high %v123_v47, %v123_v47  ;;  %v1267_v52 = vcombine.high %v124_v48, %v124_v48  ;;  %v1264_v53 = vcombine.low %v123_v47, %v123_v47  ;;  %v1266_v54 = vcombine.low %v124_v48, %v124_v48  ;;  %v27_v61 = vld [vmem:[%s2082_s4] sm:$0xff]  ;;  %v29_v62 = vld [vmem:[%s2082_s4 + $0x10] sm:$0xff] }
  0x13   :  { %422 = vmatpush1.bf16.msra.mxu0 %v1318_v18  ;;  %475 = vmatpush1.bf16.msra.mxu1 %v1319_v19  ;;  %v1366_v57 = vld [vmem:[%s2080_s1] ss:$8 sps:$4 sm:$0xff]   ;;  %v1371_v59 = vld [vmem:[%s2080_s1 + $0x10] ss:$8 sps:$4 sm:$0xff]  }
  0x14   :  { %423 = vmatprep.subr.bf16.mxu0 %v1320_v20  ;;  %476 = vmatprep.subr.bf16.mxu1 %v1322_v21  ;;  %v402_v55 = vsel %vm400_vm1, %v1264_v53, 0  ;;  %v408_v56 = vsel %vm400_vm1, %v1266_v54, 0  ;;  %v28_v63 = vld [vmem:[%s2082_s4 + $0x8] sm:$0xff]  ;;  %v30_v0 = vld [vmem:[%s2082_s4 + $0x18] sm:$0xff]  ;;  %v31_v3 = vld [vmem:[%s2082_s4 + $0x20] sm:$0xff] }
  0x15   :  { %v33_v4 = vld [vmem:[%s2082_s4 + $0x30] sm:$0xff]  ;;  %v32_v9 = vld [vmem:[%s2082_s4 + $0x28] sm:$0xff]  ;;  %v34_v10 = vld [vmem:[%s2082_s4 + $0x38] sm:$0xff] }
  0x17   :  { %424 = vmatpush1.bf16.msra.mxu0 %v1324_v22  ;;  %477 = vmatpush1.bf16.msra.mxu1 %v1325_v23 }
  0x18   :  { %425 = vmatprep.subr.bf16.mxu0 %v1326_v24  ;;  %478 = vmatprep.subr.bf16.mxu1 %v1328_v25 }
  0x1b   :  { %426 = vmatpush1.bf16.msra.mxu0 %v1330_v26  ;;  %479 = vmatpush1.bf16.msra.mxu1 %v1331_v27 }
  0x1c   :  { %427 = vmatprep.subr.bf16.mxu0 %v1332_v28  ;;  %480 = vmatprep.subr.bf16.mxu1 %v1334_v29  ;;  %v35_v29 = vld [vmem:[%s2082_s4 + $0x40] sm:$0xff] }
  0x1f   :  { %428 = vmatpush1.bf16.msra.mxu0 %v1336_v30  ;;  %481 = vmatpush1.bf16.msra.mxu1 %v1337_v31  ;;  %v37_v30 = vld [vmem:[%s2082_s4 + $0x50] sm:$0xff] }
  0x20   :  { %429 = vmatprep.subr.bf16.mxu0 %v1338_v32  ;;  %482 = vmatprep.subr.bf16.mxu1 %v1340_v33  ;;  %v36_v33 = vld [vmem:[%s2082_s4 + $0x48] sm:$0xff] }
  0x23   :  { %430 = vmatpush1.bf16.msra.mxu0 %v1342_v34  ;;  %483 = vmatpush1.bf16.msra.mxu1 %v1343_v35  ;;  %v38_v34 = vld [vmem:[%s2082_s4 + $0x58] sm:$0xff] }
  0x24   :  { %431 = vmatprep.subr.bf16.mxu0 %v1344_v36  ;;  %484 = vmatprep.subr.bf16.mxu1 %v1346_v37 }
  0x27   :  { %432 = vmatpush1.bf16.msra.mxu0 %v1348_v39  ;;  %485 = vmatpush1.bf16.msra.mxu1 %v1349_v40  ;;  %v39_v39 = vld [vmem:[%s2082_s4 + $0x60] sm:$0xff]  ;;  %v41_v40 = vld [vmem:[%s2082_s4 + $0x70] sm:$0xff] }
  0x28   :  { %433 = vmatprep.subr.bf16.mxu0 %v1350_v41  ;;  %486 = vmatprep.subr.bf16.mxu1 %v1352_v42 }
  0x2b   :  { %434 = vmatpush1.bf16.msra.mxu0 %v1354_v43  ;;  %487 = vmatpush1.bf16.msra.mxu1 %v1355_v44 }
  0x2c   :  { %435 = vmatprep.subr.bf16.mxu0 %v1356_v45  ;;  %488 = vmatprep.subr.bf16.mxu1 %v1358_v46  ;;  %v40_v45 = vld [vmem:[%s2082_s4 + $0x68] sm:$0xff]  ;;  %v42_v46 = vld [vmem:[%s2082_s4 + $0x78] sm:$0xff] }
  0x2f   :  { %436 = vmatpush1.bf16.msra.mxu0 %v1360_v49  ;;  %489 = vmatpush1.bf16.msra.mxu1 %v1361_v50 }
  0x30   :  { %1268 = vmatprep.subr.msk.bf16.mxu0 %vm400_vm1, %v1265_v51  ;;  %1271 = vmatprep.subr.msk.bf16.mxu1 %vm400_vm1, %v1267_v52 }
  0x33   :  { %438 = vmatpush1.bf16.msra.mxu0 %v402_v55  ;;  %491 = vmatpush1.bf16.msra.mxu1 %v408_v56 }
  0x36   :  { %446 = vmatmul.mubr.bf16.vlgmr.msra.gmra.mrb[0].mxu0 %v1366_v57  ;;  %499 = vmatmul.mubr.bf16.vlgmr.msra.gmra.mrb[0].mxu1 %v1366_v57 }
  0x37   :  { %1270 = vmatprep.mubr.msk.bf16.mxu0 %vm393_vm0, %v1369_v58  ;;  %1273 = vmatprep.mubr.msk.bf16.mxu1 %vm393_vm0, %v1369_v58 }
  0x3e   :  { %456 = vmatmul.mubr.bf16.gmra.mrb[4].mxu0 %v1371_v59  ;;  %509 = vmatmul.mubr.bf16.gmra.mrb[4].mxu1 %v1371_v59 }
  0x3f   :  { %596 = vmatprep.mubr.bf16.mxu0 %v1400_v60  ;;  %649 = vmatprep.mubr.bf16.mxu1 %v1400_v60 }
 0x109   :  { %v447_v1 = vpop.f32.mrb[0].mxu0  ;;  %v500_v2 = vpop.f32.mrb[0].mxu1 }
 0x10a   :  { %v448_v5 = vadd.f32 %v447_v1, %v27_v61  ;;  %v501_v6 = vadd.f32 %v500_v2, %v29_v62  ;;  %v449_v7 = vpop.f32.mrb[1].mxu0  ;;  %v502_v8 = vpop.f32.mrb[1].mxu1 }
 0x10b   :  { %v450_v11 = vadd.f32 %v449_v7, %v28_v63  ;;  %v503_v12 = vadd.f32 %v502_v8, %v30_v0  ;;  %v451_v13 = vpop.f32.mrb[2].mxu0  ;;  %v504_v14 = vpop.f32.mrb[2].mxu1  ;;  %v1373_v7 = vld [vmem:[%s2081_s2 + $0x8] sm:$0xff]   ;;  %v43_v8 = vld [vmem:[%s2082_s4 + $0x80] sm:$0xff] }
 0x10c   :  { %v452_v15 = vadd.f32 %v451_v13, %v31_v3  ;;  %v505_v16 = vadd.f32 %v504_v14, %v33_v4  ;;  %v453_v17 = vpop.f32.mrb[3].mxu0  ;;  %v506_v18 = vpop.f32.mrb[3].mxu1  ;;  %v519_v21 = vmax.f32 %v448_v5, 0.0  ;;  %v521_v22 = vmax.f32 %v501_v6, 0.0  ;;  %v1372_v6 = vld [vmem:[%s2081_s2] sm:$0xff]  }
 0x10d   :  { %v454_v19 = vadd.f32 %v453_v17, %v32_v9  ;;  %v507_v20 = vadd.f32 %v506_v18, %v34_v10  ;;  %v520_v25 = vmax.f32 %v450_v11, 0.0  ;;  %v522_v26 = vmax.f32 %v503_v12, 0.0  ;;  %v45_v9 = vld [vmem:[%s2082_s4 + $0x90] sm:$0xff]  ;;  %v44_v10 = vld [vmem:[%s2082_s4 + $0x88] sm:$0xff]  ;;  %v46_v11 = vld [vmem:[%s2082_s4 + $0x98] sm:$0xff] }
 0x10e   :  { %v523_v23 = vmax.f32 %v452_v15, 0.0  ;;  %v525_v24 = vmax.f32 %v505_v16, 0.0  ;;  %v47_v14 = vld [vmem:[%s2082_s4 + $0xa0] sm:$0xff]  ;;  %v49_v15 = vld [vmem:[%s2082_s4 + $0xb0] sm:$0xff] }
 0x10f   :  { %v524_v27 = vmax.f32 %v454_v19, 0.0  ;;  %v526_v28 = vmax.f32 %v507_v20, 0.0  ;;  %v48_v20 = vld [vmem:[%s2082_s4 + $0xa8] sm:$0xff] }
 0x110   :  { %v535_v31 = vpack.c.bf16 %v523_v23, %v519_v21  ;;  %v537_v32 = vpack.c.bf16 %v525_v24, %v521_v22  ;;  %v50_v21 = vld [vmem:[%s2082_s4 + $0xb8] sm:$0xff] }
 0x111   :  { %v536_v35 = vpack.c.bf16 %v524_v27, %v520_v25  ;;  %v538_v36 = vpack.c.bf16 %v526_v28, %v522_v26  ;;  %v457_v37 = vpop.f32.mrb[4].mxu0  ;;  %v510_v38 = vpop.f32.mrb[4].mxu1 }
 0x112   :  { %v458_v41 = vadd.f32 %v457_v37, %v35_v29  ;;  %v511_v42 = vadd.f32 %v510_v38, %v37_v30  ;;  %v459_v43 = vpop.f32.mrb[5].mxu0  ;;  %v512_v44 = vpop.f32.mrb[5].mxu1 }
 0x113   :  { %v460_v47 = vadd.f32 %v459_v43, %v36_v33  ;;  %v513_v48 = vadd.f32 %v512_v44, %v38_v34  ;;  %v461_v49 = vpop.f32.mrb[6].mxu0  ;;  %v514_v50 = vpop.f32.mrb[6].mxu1  ;;  %564 = vmatprep.subr.bf16.mxu0 %v536_v35  ;;  %617 = vmatprep.subr.bf16.mxu1 %v538_v36  ;;  %v52_v44 = vld [vmem:[%s2082_s4 + $0xc8] sm:$0xff] }
 0x114   :  { %v462_v51 = vadd.f32 %v461_v49, %v39_v39  ;;  %v515_v52 = vadd.f32 %v514_v50, %v41_v40  ;;  %v463_v53 = vpop.f32.mrb[7].mxu0  ;;  %v516_v54 = vpop.f32.mrb[7].mxu1  ;;  %565 = vmatpush1.bf16.msra.mxu0 %v535_v31  ;;  %618 = vmatpush1.bf16.msra.mxu1 %v537_v32  ;;  %v527_v57 = vmax.f32 %v458_v41, 0.0  ;;  %v529_v58 = vmax.f32 %v511_v42, 0.0  ;;  %v51_v40 = vld [vmem:[%s2082_s4 + $0xc0] sm:$0xff]  ;;  %v53_v41 = vld [vmem:[%s2082_s4 + $0xd0] sm:$0xff] }
 0x115   :  { %v464_v55 = vadd.f32 %v463_v53, %v40_v45  ;;  %v517_v56 = vadd.f32 %v516_v54, %v42_v46  ;;  %v528_v62 = vmax.f32 %v460_v47, 0.0  ;;  %v530_v63 = vmax.f32 %v513_v48, 0.0  ;;  %v54_v45 = vld [vmem:[%s2082_s4 + $0xd8] sm:$0xff]  ;;  %v55_v50 = vld [vmem:[%s2082_s4 + $0xe0] sm:$0xff] }
 0x116   :  { %v531_v59 = vmax.f32 %v462_v51, 0.0  ;;  %v533_v61 = vmax.f32 %v515_v52, 0.0  ;;  %v57_v51 = vld [vmem:[%s2082_s4 + $0xf0] sm:$0xff] }
 0x117   :  { %v532_v0 = vmax.f32 %v464_v55, 0.0  ;;  %v534_v1 = vmax.f32 %v517_v56, 0.0  ;;  %v56_v56 = vld [vmem:[%s2082_s4 + $0xe8] sm:$0xff] }
 0x118   :  { %v539_v2 = vpack.c.bf16 %v531_v59, %v527_v57  ;;  %v541_v3 = vpack.c.bf16 %v533_v61, %v529_v58  ;;  %v58_v57 = vld [vmem:[%s2082_s4 + $0xf8] sm:$0xff] }
 0x119   :  { %v540_v4 = vpack.c.bf16 %v532_v0, %v528_v62  ;;  %v542_v5 = vpack.c.bf16 %v534_v1, %v530_v63 }
 0x11b   :  { %566 = vmatprep.subr.bf16.mxu0 %v540_v4  ;;  %619 = vmatprep.subr.bf16.mxu1 %v542_v5 }
 0x11c   :  { %567 = vmatpush1.bf16.msra.mxu0 %v539_v2  ;;  %620 = vmatpush1.bf16.msra.mxu1 %v541_v3 }
 0x11f   :  { %1276 = vmatmul.mubr.msk.bf16.vlgmr.msra.gmra.mrb[8].mxu0 %vm557_vm2, %v1372_v6  ;;  %1278 = vmatmul.mubr.msk.bf16.vlgmr.msra.gmra.mrb[8].mxu1 %vm557_vm2, %v1372_v6 }
 0x120   :  { %606 = vmatprep.mubr.bf16.mxu0 %v1400_v60  ;;  %659 = vmatprep.mubr.bf16.mxu1 %v1400_v60 }
 0x127   :  { %1277 = vmatmul.mubr.msk.bf16.gmra.mrb[12].mxu0 %vm557_vm2, %v1373_v7  ;;  %1279 = vmatmul.mubr.msk.bf16.gmra.mrb[12].mxu1 %vm557_vm2, %v1373_v7 }
 0x128   :  { %743 = vmatprep.mubr.bf16.mxu0 %v1400_v60  ;;  %794 = vmatprep.mubr.bf16.mxu1 %v1400_v60 }
 0x1f2   :  { %v598_v12 = vpop.f32.mrb[8].mxu0  ;;  %v651_v13 = vpop.f32.mrb[8].mxu1 }
 0x1f3   :  { %v599_v16 = vadd.f32 %v598_v12, %v43_v8  ;;  %v652_v17 = vadd.f32 %v651_v13, %v45_v9  ;;  %v600_v18 = vpop.f32.mrb[9].mxu0  ;;  %v653_v19 = vpop.f32.mrb[9].mxu1 }
 0x1f4   :  { %v601_v22 = vadd.f32 %v600_v18, %v44_v10  ;;  %v654_v23 = vadd.f32 %v653_v19, %v46_v11  ;;  %v602_v24 = vpop.f32.mrb[10].mxu0  ;;  %v655_v25 = vpop.f32.mrb[10].mxu1  ;;  %v1375_v18 = vld [vmem:[%s2083_s3 + $0x8] ss:$0 sps:$4 sm:$0xff]   ;;  %v885_v19 = vld [vmem:[%s2084_s5] sm:$0xff] }
 0x1f5   :  { %v603_v26 = vadd.f32 %v602_v24, %v47_v14  ;;  %v656_v27 = vadd.f32 %v655_v25, %v49_v15  ;;  %v604_v28 = vpop.f32.mrb[11].mxu0  ;;  %v657_v29 = vpop.f32.mrb[11].mxu1  ;;  %v670_v32 = vmax.f32 %v599_v16, 0.0  ;;  %v672_v33 = vmax.f32 %v652_v17, 0.0  ;;  %v1374_v17 = vld [vmem:[%s2083_s3] sm:$0xff]  }
 0x1f6   :  { %v605_v30 = vadd.f32 %v604_v28, %v48_v20  ;;  %v658_v31 = vadd.f32 %v657_v29, %v50_v21  ;;  %v671_v36 = vmax.f32 %v601_v22, 0.0  ;;  %v673_v37 = vmax.f32 %v654_v23, 0.0  ;;  %v886_v21 = vld [vmem:[%s2084_s5 + $0x8] sm:$0xff]  ;;  %v61_v28 = vld [vmem:[%s2082_s4 + $0x110] sm:$0xff] }
 0x1f7   :  { %v674_v34 = vmax.f32 %v603_v26, 0.0  ;;  %v676_v35 = vmax.f32 %v656_v27, 0.0  ;;  %v889_v20 = vrot.slane %v885_v19, 6  ;;  %v916_v23 = vlaneseq  ;;  %v59_v27 = vld [vmem:[%s2082_s4 + $0x100] sm:$0xff] }
 0x1f8   :  { %v675_v38 = vmax.f32 %v605_v30, 0.0  ;;  %v677_v39 = vmax.f32 %v658_v31, 0.0  ;;  %v60_v31 = vld [vmem:[%s2082_s4 + $0x108] sm:$0xff] }
 0x1f9   :  { %v686_v42 = vpack.c.bf16 %v674_v34, %v670_v32  ;;  %v688_v43 = vpack.c.bf16 %v676_v35, %v672_v33  ;;  %v1737_v22 = vsub.f32 %v885_v19, %v889_v20  ;;  %v1742_v26 = vshrl.u32 %v916_v23, 7  ;;  %v62_v32 = vld [vmem:[%s2082_s4 + $0x118] sm:$0xff]  ;;  %v69_v23 = vld [vmem:[%s2082_s4 + $0x150] sm:$0xff] }
 0x1fa   :  { %v687_v46 = vpack.c.bf16 %v675_v38, %v671_v36  ;;  %v689_v47 = vpack.c.bf16 %v677_v39, %v673_v37  ;;  %v608_v48 = vpop.f32.mrb[12].mxu0  ;;  %v661_v49 = vpop.f32.mrb[12].mxu1 }
 0x1fb   :  { %v609_v52 = vadd.f32 %v608_v48, %v51_v40  ;;  %v662_v53 = vadd.f32 %v661_v49, %v53_v41  ;;  %v610_v54 = vpop.f32.mrb[13].mxu0  ;;  %v663_v55 = vpop.f32.mrb[13].mxu1  ;;  %v895_v24 = vmul.f32 0.5, %v1737_v22  ;;  %v1758_v33 = vsub.s32 2, %v1742_v26 }
 0x1fc   :  { %v611_v58 = vadd.f32 %v610_v54, %v52_v44  ;;  %v664_v59 = vadd.f32 %v663_v55, %v54_v45  ;;  %v612_v61 = vpop.f32.mrb[14].mxu0  ;;  %v665_v62 = vpop.f32.mrb[14].mxu1  ;;  %711 = vmatprep.subr.bf16.mxu0 %v687_v46  ;;  %762 = vmatprep.subr.bf16.mxu1 %v689_v47  ;;  %v1761_v36 = vsub.s32 3, %v1742_v26 }
 0x1fd   :  { %v613_v63 = vadd.f32 %v612_v61, %v55_v50  ;;  %v666_v0 = vadd.f32 %v665_v62, %v57_v51  ;;  %v614_v1 = vpop.f32.mrb[15].mxu0  ;;  %v667_v2 = vpop.f32.mrb[15].mxu1  ;;  %712 = vmatpush1.bf16.msra.mxu0 %v686_v42  ;;  %763 = vmatpush1.bf16.msra.mxu1 %v688_v43  ;;  %v678_v5 = vmax.f32 %v609_v52, 0.0  ;;  %v680_v6 = vmax.f32 %v662_v53, 0.0 }
 0x1fe   :  { %v615_v3 = vadd.f32 %v614_v1, %v56_v56  ;;  %v668_v4 = vadd.f32 %v667_v2, %v58_v57  ;;  %v679_v9 = vmax.f32 %v611_v58, 0.0  ;;  %v681_v10 = vmax.f32 %v664_v59, 0.0 }
 0x1ff   :  { %v682_v7 = vmax.f32 %v613_v63, 0.0  ;;  %v684_v8 = vmax.f32 %v666_v0, 0.0  ;;  %v1286_v29 = vrot.slane %v895_v24, 10  ;;  %v919_v49 = vrot.slane %v1737_v22, %v1758_v33 }
 0x200   :  { %v683_v11 = vmax.f32 %v615_v3, 0.0  ;;  %v685_v12 = vmax.f32 %v668_v4, 0.0  ;;  %v1782_v50 = vsub.s32 0, %v1742_v26  ;;  %v1001_v55 = vrot.slane %v1737_v22, %v1761_v36 }
 0x201   :  { %v690_v13 = vpack.c.bf16 %v682_v7, %v678_v5  ;;  %v692_v14 = vpack.c.bf16 %v684_v8, %v680_v6  ;;  %v1773_v44 = vadd.f32 %v1286_v29, %v885_v19  ;;  %v922_v56 = vsub.s32 6, %v1742_v26 }
 0x202   :  { %v691_v15 = vpack.c.bf16 %v683_v11, %v679_v9  ;;  %v693_v16 = vpack.c.bf16 %v685_v12, %v681_v10  ;;  %v1796_v59 = vsub.s32 1, %v1742_v26  ;;  %v1807_v4 = vrot.slane %v919_v49, %v1758_v33 }
 0x203   :  { %v961_v5 = vrot.slane %v1773_v44, %v1782_v50  ;;  %v1812_v8 = vrot.slane %v1001_v55, %v1761_v36  ;;  %v923_v9 = vrot.slane %v1737_v22, %v922_v56 }
 0x204   :  { %713 = vmatprep.subr.bf16.mxu0 %v691_v15  ;;  %764 = vmatprep.subr.bf16.mxu1 %v693_v16 }
 0x205   :  { %714 = vmatpush1.bf16.msra.mxu0 %v690_v13  ;;  %765 = vmatpush1.bf16.msra.mxu1 %v692_v14  ;;  %v1041_v14 = vrot.slane %v1773_v44, %v1796_v59 }
 0x208   :  { %1282 = vmatmul.mubr.msk.bf16.vlgmr.msra.gmra.mrb[16].mxu0 %vm557_vm2, %v1374_v17  ;;  %1284 = vmatmul.mubr.msk.bf16.vlgmr.msra.gmra.mrb[16].mxu1 %vm557_vm2, %v1374_v17 }
 0x209   :  { %753 = vmatprep.mubr.bf16.mxu0 %v1400_v60  ;;  %804 = vmatprep.mubr.bf16.mxu1 %v1400_v60  ;;  %v890_v60 = vrot.slane %v886_v21, 6 }
 0x20b   :  { %v1740_v25 = vsub.f32 %v886_v21, %v890_v60  ;;  %v67_v60 = vld [vmem:[%s2082_s4 + $0x140] sm:$0xff] }
 0x20d   :  { %v896_v30 = vmul.f32 0.5, %v1740_v25  ;;  %v927_v61 = vrot.slane %v1740_v25, %v1758_v33  ;;  %v1009_v1 = vrot.slane %v1740_v25, %v1761_v36 }
 0x20f   :  { %v1287_v46 = vrot.slane %v896_v30, 10  ;;  %v1820_v15 = vrot.slane %v927_v61, %v1758_v33  ;;  %v1834_v30 = vrot.slane %v961_v5, %v1782_v50 }
 0x210   :  { %1283 = vmatmul.mubr.msk.bf16.gmra.mrb[20].mxu0 %vm557_vm2, %v1375_v18  ;;  %1285 = vmatmul.mubr.msk.bf16.gmra.mrb[20].mxu1 %vm557_vm2, %v1375_v18 }
 0x211   :  { %v1802_v0 = vadd.f32 %v1287_v46, %v886_v21  ;;  %v1825_v21 = vrot.slane %v1009_v1, %v1761_v36  ;;  %v964_v46 = vsub.s32 4, %v1742_v26 }
 0x213   :  { %v969_v20 = vrot.slane %v1802_v0, %v1782_v50 }
 0x215   :  { %v1852_v5 = vrot.slane %v969_v20, %v1782_v50  ;;  %v64_v20 = vld [vmem:[%s2082_s4 + $0x128] sm:$0xff] }
 0x2db   :  { %v745_v34 = vpop.f32.mrb[16].mxu0  ;;  %v796_v35 = vpop.f32.mrb[16].mxu1 }
 0x2dc   :  { %v1763_v37 = vadd.f32 %v745_v34, %v59_v27  ;;  %v1765_v38 = vadd.f32 %v796_v35, %v61_v28  ;;  %v747_v39 = vpop.f32.mrb[17].mxu0  ;;  %v798_v40 = vpop.f32.mrb[17].mxu1 }
 0x2dd   :  { %v1767_v41 = vadd.f32 %v747_v39, %v60_v31  ;;  %v1769_v42 = vadd.f32 %v798_v40, %v62_v32  ;;  %v1771_v43 = vpop.f32.mrb[18].mxu0  ;;  %v1775_v45 = vpop.f32.mrb[18].mxu1  ;;  %v1049_v31 = vrot.slane %v1802_v0, %v1796_v59  ;;  %v1839_v40 = vrot.slane %v923_v9, %v1758_v33 }
 0x2de   :  { %v813_v47 = vrot.slane %v1763_v37, 4  ;;  %v825_v48 = vrot.slane %v1765_v38, 4  ;;  %v1784_v51 = vpop.f32.mrb[19].mxu0  ;;  %v1786_v52 = vpop.f32.mrb[19].mxu1 }
 0x2df   :  { %v819_v53 = vrot.slane %v1767_v41, 4  ;;  %v831_v54 = vrot.slane %v1769_v42, 4 }
 0x2e0   :  { %v814_v57 = vmax.f32 %v1763_v37, %v813_v47  ;;  %v826_v58 = vmax.f32 %v1765_v38, %v825_v48 }
 0x2e1   :  { %v820_v62 = vmax.f32 %v1767_v41, %v819_v53  ;;  %v832_v63 = vmax.f32 %v1769_v42, %v831_v54 }
 0x2e2   :  { %v815_v2 = vrot.slane %v814_v57, 2  ;;  %v827_v3 = vrot.slane %v826_v58, 2 }
 0x2e3   :  { %v821_v6 = vrot.slane %v820_v62, 2  ;;  %v833_v7 = vrot.slane %v832_v63, 2  ;;  %v755_v10 = vpop.f32.mrb[20].mxu0  ;;  %v806_v11 = vpop.f32.mrb[20].mxu1 }
 0x2e4   :  { %v816_v12 = vmax.f32 %v814_v57, %v815_v2  ;;  %v828_v13 = vmax.f32 %v826_v58, %v827_v3  ;;  %v757_v16 = vpop.f32.mrb[21].mxu0  ;;  %v808_v17 = vpop.f32.mrb[21].mxu1  ;;  %v756_v49 = vadd.f32 %v755_v10, %v67_v60  ;;  %v807_v53 = vadd.f32 %v806_v11, %v69_v23 }
 0x2e5   :  { %v822_v18 = vmax.f32 %v820_v62, %v821_v6  ;;  %v834_v19 = vmax.f32 %v832_v63, %v833_v7  ;;  %v759_v24 = vpop.f32.mrb[22].mxu0  ;;  %v810_v27 = vpop.f32.mrb[22].mxu1  ;;  %v1843_v57 = vrot.slane %v1041_v14, %v1796_v59  ;;  %v1004_v58 = vsub.s32 7, %v1742_v26  ;;  %v63_v14 = vld [vmem:[%s2082_s4 + $0x120] sm:$0xff] }
 0x2e6   :  { %v817_v28 = vrot.slane %v816_v12, 1  ;;  %v829_v29 = vrot.slane %v828_v13, 1  ;;  %v760_v32 = vpop.f32.mrb[23].mxu0  ;;  %v811_v34 = vpop.f32.mrb[23].mxu1  ;;  %v1044_v63 = vsub.s32 5, %v1742_v26  ;;  %v1855_v10 = vrot.slane %v1049_v31, %v1796_v59 }
 0x2e7   :  { %v823_v35 = vrot.slane %v822_v18, 1  ;;  %v835_v39 = vrot.slane %v834_v19, 1  ;;  %v910_v1 = vmin.f32 %v756_v49, 4.1351666  ;;  %v912_v6 = vmin.f32 %v807_v53, 4.1351666 }
 0x2e8   :  { %v818_v47 = vmax.f32 %v816_v12, %v817_v28  ;;  %v830_v48 = vmax.f32 %v828_v13, %v829_v29  ;;  %v1867_v12 = vrot.slane %v1802_v0, %v964_v46  ;;  %v70_v13 = vld [vmem:[%s2082_s4 + $0x158] sm:$0xff]  ;;  %v1005_v26 = vrot.slane %v1737_v22, %v1004_v58 }
 0x2e9   :  { %v824_v54 = vmax.f32 %v822_v18, %v823_v35  ;;  %v836_v55 = vmax.f32 %v834_v19, %v835_v39  ;;  %v65_v18 = vld [vmem:[%s2082_s4 + $0x130] sm:$0xff]  ;;  %v1078_v19 = vmul.f32 1.442695, %v910_v1  ;;  %v1013_v60 = vrot.slane %v1740_v25, %v1004_v58  ;;  %v66_v22 = vld [vmem:[%s2082_s4 + $0x138] sm:$0xff] }
 0x2ea   :  { %v837_v61 = vsub.f32 %v1763_v37, %v818_v47  ;;  %v839_v62 = vsub.f32 %v1765_v38, %v830_v48  ;;  %v1858_v37 = vrot.slane %v1773_v44, %v964_v46  ;;  %v68_v38 = vld [vmem:[%s2082_s4 + $0x148] sm:$0xff]  ;;  %v1082_v23 = vmul.f32 1.442695, %v912_v6 }
 0x2eb   :  { %v838_v2 = vsub.f32 %v1767_v41, %v824_v54  ;;  %v840_v3 = vsub.f32 %v1769_v42, %v836_v55  ;;  %v931_v42 = vrot.slane %v1740_v25, %v922_v56  ;;  %v1045_v56 = vrot.slane %v1773_v44, %v1044_v63 }
 0x2ec   :  { %v841_v7 = vmul.f32 1.442695, %v837_v61  ;;  %v845_v9 = vmul.f32 1.442695, %v839_v62  ;;  %v758_v24 = vadd.f32 %v757_v16, %v68_v38  ;;  %v985_v27 = vrot.slane %v1858_v37, %v1782_v50 }
 0x2ed   :  { %v843_v11 = vmul.f32 1.442695, %v838_v2  ;;  %v847_v41 = vmul.f32 1.442695, %v840_v3  ;;  %v1053_v44 = vrot.slane %v1802_v0, %v1044_v63  ;;  %v809_v28 = vadd.f32 %v808_v17, %v70_v13 }
 0x2ee   :  { %1376 = vpow2.f32 %v841_v7  ;;  %v750_v29 = vadd.f32 %v1771_v43, %v63_v14  ;;  %v801_v31 = vadd.f32 %v1775_v45, %v65_v18  ;;  %v1893_v25 = vrot.slane %v931_v42, %v1758_v33  ;;  %v907_v16 = vld [vmem:[%s2085_s6] ss:$2 sm:$0xf]  ;;  %v1907_v43 = vld [vmem:[%s2085_s6 + $0x1] ss:$2 sm:$0xf] }
 0x2ef   :  { %1378 = vpow2.f32 %v845_v9  ;;  %v752_v32 = vadd.f32 %v1784_v51, %v64_v20  ;;  %v1900_v34 = vrot.slane %v1005_v26, %v1761_v36  ;;  %v993_v0 = vrot.slane %v1867_v12, %v1782_v50 }
 0x2f0   :  { %1380 = vpow2.f32 %v843_v11  ;;  %v1065_v45 = vrot.slane %v1045_v56, %v1796_v59  ;;  %v803_v17 = vadd.f32 %v1786_v52, %v66_v22  ;;  %v911_v35 = vmin.f32 %v758_v24, 4.1351666 }
 0x2f1   :  { %1382 = vpow2.f32 %v847_v41  ;;  %v1912_v51 = vrot.slane %v1013_v60, %v1761_v36  ;;  %v1073_v39 = vrot.slane %v1053_v44, %v1796_v59  ;;  %v1916_v46 = vrot.slane %v907_v16, %v1782_v50 }
 0x2f2   :  { %1384 = vpow2.f32 %v1078_v19  ;;  %v913_v47 = vmin.f32 %v809_v28, 4.1351666  ;;  %v952_v48 = vmul.f32 %v1807_v4, %v750_v29  ;;  %v1034_v49 = vmul.f32 %v1812_v8, %v750_v29 }
 0x2f3   :  { %1386 = vpow2.f32 %v1082_v23  ;;  %v954_v53 = vmul.f32 %v1820_v15, %v801_v31  ;;  %v1923_v52 = vrot.slane %v1907_v43, %v1782_v50  ;;  %v1036_v54 = vmul.f32 %v1825_v21, %v801_v31 }
 0x2f4   :  { %v953_v55 = vmul.f32 %v1839_v40, %v752_v32  ;;  %v1035_v58 = vmul.f32 %v1900_v34, %v752_v32  ;;  %v1929_v61 = vrot.slane %v907_v16, %v1758_v33  ;;  %v955_v62 = vmul.f32 %v1893_v25, %v803_v17 }
 0x2f5   :  { %v1934_v63 = vrot.slane %v1907_v43, %v1758_v33  ;;  %v1080_v1 = vmul.f32 1.442695, %v911_v35  ;;  %v1937_v2 = vrot.slane %v907_v16, %v1796_v59  ;;  %v1037_v3 = vmul.f32 %v1912_v51, %v803_v17 }
 0x2f6   :  { %v1944_v6 = vrot.slane %v1907_v43, %v1796_v59  ;;  %v1084_v7 = vmul.f32 1.442695, %v913_v47  ;;  %v1947_v9 = vrot.slane %v907_v16, %v1761_v36  ;;  %v994_v38 = vadd.f32 %v1834_v30, %v952_v48 }
 0x2f7   :  { %v1074_v11 = vadd.f32 %v1843_v57, %v1034_v49  ;;  %v1955_v41 = vadd.f32 %v1852_v5, %v954_v53  ;;  %v1961_v12 = vadd.f32 %v1855_v10, %v1036_v54  ;;  %v1963_v13 = vadd.f32 %v985_v27, %v953_v55 }
 0x2f8   :  { %v1939_v50 = vpop.eup %1376  ;;  %v1965_v14 = vadd.f32 %v1065_v45, %v1035_v58  ;;  %v1971_v26 = vadd.f32 %v993_v0, %v955_v62  ;;  %1388 = vpow2.f32 %v1080_v1  ;;  %v1975_v10 = vadd.f32 %v1073_v39, %v1037_v3 }
 0x2f9   :  { %v1949_v37 = vpop.eup %1378  ;;  %v849_v33 = vrot.slane %v1939_v50, 4  ;;  %1390 = vpow2.f32 %v1084_v7 }
 0x2fa   :  { %v1957_v42 = vpop.eup %1380  ;;  %v861_v59 = vrot.slane %v1949_v37, 4 }
 0x2fb   :  { %v1967_v18 = vpop.eup %1382  ;;  %v850_v30 = vadd.f32 %v1939_v50, %v849_v33  ;;  %v855_v57 = vrot.slane %v1957_v42, 4 }
 0x2fc   :  { %v1385_v5 = vpop.eup %1384  ;;  %v862_v56 = vadd.f32 %v1949_v37, %v861_v59  ;;  %v867_v19 = vrot.slane %v1967_v18, 4 }
 0x2fd   :  { %v1387_v20 = vpop.eup %1386  ;;  %v851_v60 = vrot.slane %v850_v30, 2  ;;  %v856_v23 = vadd.f32 %v1957_v42, %v855_v57  ;;  %v1086_v24 = vmul.f32 %v1385_v5, %v1807_v4  ;;  %v1090_v27 = vmul.f32 %v1385_v5, %v1812_v8 }
 0x2fe   :  { %v863_v22 = vrot.slane %v862_v56, 2  ;;  %v868_v44 = vadd.f32 %v1967_v18, %v867_v19  ;;  %v1088_v28 = vmul.f32 %v1387_v20, %v1820_v15  ;;  %v1092_v29 = vmul.f32 %v1387_v20, %v1825_v21 }
 0x2ff   :  { %v852_v31 = vadd.f32 %v851_v60, %v850_v30  ;;  %v857_v16 = vrot.slane %v856_v23, 2  ;;  %v1094_v32 = vmul.f32 0.5, %v1086_v24  ;;  %v1135_v0 = vmul.f32 0.5, %v1090_v27 }
 0x300   :  { %v864_v45 = vadd.f32 %v863_v22, %v862_v56  ;;  %v869_v17 = vrot.slane %v868_v44, 2  ;;  %v1096_v35 = vmul.f32 0.5, %v1088_v28  ;;  %v1137_v39 = vmul.f32 0.5, %v1092_v29 }
 0x301   :  { %v853_v47 = vrot.slane %v852_v31, 1  ;;  %v858_v48 = vadd.f32 %v857_v16, %v856_v23  ;;  %v1098_v4 = vsub.f32 %v994_v38, %v1094_v32  ;;  %v1139_v49 = vsub.f32 %v1074_v11, %v1135_v0 }
 0x302   :  { %v865_v8 = vrot.slane %v864_v45, 1  ;;  %v870_v53 = vadd.f32 %v869_v17, %v868_v44  ;;  %v1176_v54 = vadd.f32 %v1094_v32, %v994_v38  ;;  %v1192_v55 = vadd.f32 %v1135_v0, %v1074_v11  ;;  %v1389_v59 = vpop.eup %1388 }
 0x303   :  { %v854_v58 = vadd.f32 %v853_v47, %v852_v31  ;;  %v859_v15 = vrot.slane %v858_v48, 1  ;;  %v1102_v62 = vmax.f32 %v1098_v4, 0.0  ;;  %v1143_v21 = vmax.f32 %v1139_v49, 0.0  ;;  %v1391_v56 = vpop.eup %1390 }
 0x304   :  { %v866_v1 = vadd.f32 %v865_v8, %v864_v45  ;;  %v871_v3 = vrot.slane %v870_v53, 1  ;;  %v1180_v7 = vmax.f32 %v1176_v54, 0.0  ;;  %v1196_v33 = vmax.f32 %v1192_v55, 0.0 }
 0x305   :  { %1392 = vrcp.f32 %v854_v58  ;;  %v860_v30 = vadd.f32 %v859_v15, %v858_v48  ;;  %v1127_v57 = vmin.f32 %v1102_v62, %v1916_v46  ;;  %v1168_v5 = vmin.f32 %v1143_v21, %v1923_v52 }
 0x306   :  { %1394 = vrcp.f32 %v866_v1  ;;  %v872_v19 = vadd.f32 %v871_v3, %v870_v53  ;;  %v1184_v38 = vmin.f32 %v1180_v7, %v1916_v46  ;;  %v1200_v11 = vmin.f32 %v1196_v33, %v1923_v52 }
 0x307   :  { %1396 = vrcp.f32 %v860_v30  ;;  %1131 = vst [vmem:[%s2086_s7 + $0x20] sm:$0xf] %v1127_v57  ;;  %1172 = vst [vmem:[%s2086_s7 + $0x20] sm:$0xf0] %v1168_v5  ;;  %v1100_v20 = vsub.f32 %v1955_v41, %v1096_v35  ;;  %v1141_v60 = vsub.f32 %v1961_v12, %v1137_v39  ;;  %v1178_v23 = vadd.f32 %v1096_v35, %v1955_v41 }
 0x308   :  { %1398 = vrcp.f32 %v872_v19  ;;  %1188 = vst [vmem:[%s2086_s7 + $0x40] sm:$0xf] %v1184_v38  ;;  %1204 = vst [vmem:[%s2086_s7 + $0x40] sm:$0xf0] %v1200_v11  ;;  %v1194_v46 = vadd.f32 %v1137_v39, %v1961_v12  ;;  %v1087_v52 = vmul.f32 %v1389_v59, %v1839_v40  ;;  %v1091_v24 = vmul.f32 %v1389_v59, %v1900_v34 }
 0x309   :  { %v1104_v27 = vmax.f32 %v1100_v20, 0.0  ;;  %v1145_v22 = vmax.f32 %v1141_v60, 0.0  ;;  %v1182_v44 = vmax.f32 %v1178_v23, 0.0  ;;  %v1089_v41 = vmul.f32 %v1391_v56, %v1893_v25 }
 0x30a   :  { %v1198_v28 = vmax.f32 %v1194_v46, 0.0  ;;  %v1095_v29 = vmul.f32 0.5, %v1087_v52  ;;  %v1136_v31 = vmul.f32 0.5, %v1091_v24  ;;  %v1093_v16 = vmul.f32 %v1391_v56, %v1912_v51 }
 0x30b   :  { %v1129_v32 = vmin.f32 %v1104_v27, %v1929_v61  ;;  %v1170_v0 = vmin.f32 %v1145_v22, %v1934_v63  ;;  %v1186_v12 = vmin.f32 %v1182_v44, %v1929_v61  ;;  %v1097_v45 = vmul.f32 0.5, %v1089_v41 }
 0x30c   :  { %v1202_v40 = vmin.f32 %v1198_v28, %v1934_v63  ;;  %v1099_v34 = vsub.f32 %v1963_v13, %v1095_v29  ;;  %v1140_v17 = vsub.f32 %v1965_v14, %v1136_v31  ;;  %v1177_v25 = vadd.f32 %v1095_v29, %v1963_v13 }
 0x30d   :  { %1133 = vst [vmem:[%s2086_s7 + $0x30] sm:$0xf] %v1129_v32  ;;  %1174 = vst [vmem:[%s2086_s7 + $0x30] sm:$0xf0] %v1170_v0  ;;  %v1193_v51 = vadd.f32 %v1136_v31, %v1965_v14  ;;  %v1101_v61 = vsub.f32 %v1971_v26, %v1097_v45  ;;  %v1138_v63 = vmul.f32 0.5, %v1093_v16  ;;  %v1179_v35 = vadd.f32 %v1097_v45, %v1971_v26 }
 0x30e   :  { %1190 = vst [vmem:[%s2086_s7 + $0x50] sm:$0xf] %v1186_v12  ;;  %1206 = vst [vmem:[%s2086_s7 + $0x50] sm:$0xf0] %v1202_v40  ;;  %v1103_v13 = vmax.f32 %v1099_v34, 0.0  ;;  %v1144_v39 = vmax.f32 %v1140_v17, 0.0  ;;  %v1163_v48 = vrot.slane %v1907_v43, %v1761_v36 }
 0x30f   :  { %v1181_v47 = vmax.f32 %v1177_v25, 0.0  ;;  %v1393_v4 = vpop.eup %1392  ;;  %v1197_v49 = vmax.f32 %v1193_v51, 0.0  ;;  %v1105_v8 = vmax.f32 %v1101_v61, 0.0  ;;  %v1142_v14 = vsub.f32 %v1975_v10, %v1138_v63 }
 0x310   :  { %v1183_v53 = vmax.f32 %v1179_v35, 0.0  ;;  %v1395_v54 = vpop.eup %1394  ;;  %v877_v55 = vmul.f32 %v1393_v4, %v1939_v50  ;;  %v1128_v26 = vmin.f32 %v1103_v13, %v1937_v2  ;;  %v1169_v58 = vmin.f32 %v1144_v39, %v1944_v6 }
 0x311   :  { %v1185_v15 = vmin.f32 %v1181_v47, %v1937_v2  ;;  %v1397_v62 = vpop.eup %1396  ;;  %v879_v21 = vmul.f32 %v1395_v54, %v1949_v37  ;;  %v1201_v36 = vmin.f32 %v1197_v49, %v1944_v6  ;;  %v1130_v43 = vmin.f32 %v1105_v8, %v1947_v9 }
 0x312   :  { %v1146_v1 = vmax.f32 %v1142_v14, 0.0  ;;  %v1399_v3 = vpop.eup %1398  ;;  %881 = vst [vmem:[%s2086_s7] sm:$0xff] %v877_v55  ;;  %v878_v50 = vmul.f32 %v1397_v62, %v1957_v42  ;;  %1132 = vst [vmem:[%s2086_s7 + $0x28] sm:$0xf] %v1128_v26  ;;  %v1187_v2 = vmin.f32 %v1183_v53, %v1947_v9  ;;  %v1195_v6 = vadd.f32 %v1138_v63, %v1975_v10 }
 0x313   :  { %1173 = vst [vmem:[%s2086_s7 + $0x28] sm:$0xf0] %v1169_v58  ;;  %1189 = vst [vmem:[%s2086_s7 + $0x48] sm:$0xf] %v1185_v15  ;;  %v880_v37 = vmul.f32 %v1399_v3, %v1967_v18 }
 0x314   :  { %883 = vst [vmem:[%s2086_s7 + $0x10] sm:$0xff] %v879_v21  ;;  %1205 = vst [vmem:[%s2086_s7 + $0x48] sm:$0xf0] %v1201_v36  ;;  %v1171_v42 = vmin.f32 %v1146_v1, %v1163_v48  ;;  %v1199_v9 = vmax.f32 %v1195_v6, 0.0 }
 0x315   :  { %1134 = vst [vmem:[%s2086_s7 + $0x38] sm:$0xf] %v1130_v43  ;;  %882 = vst [vmem:[%s2086_s7 + $0x8] sm:$0xff] %v878_v50 }
 0x316   :  { %1191 = vst [vmem:[%s2086_s7 + $0x58] sm:$0xf] %v1187_v2  ;;  %884 = vst [vmem:[%s2086_s7 + $0x18] sm:$0xff] %v880_v37  ;;  %v1203_v18 = vmin.f32 %v1199_v9, %v1163_v48 }
 0x317   :  { %1175 = vst [vmem:[%s2086_s7 + $0x38] sm:$0xf0] %v1171_v42 }
 0x318   :  { %1207 = vst [vmem:[%s2086_s7 + $0x58] sm:$0xf0] %v1203_v18 }

</bundles_post_ra>
